<compile_context>
chip_gen: v5e
topology: v5e:2x2
jax: 0.10.0
libtpu: 0.0.40
codegen_flags: <defaults>
</compile_context>

<pallas_src>
import jax
import jax.numpy as jnp
from jax.experimental import pallas as pl
from jax.experimental.pallas import tpu as pltpu


def _round_up(x, m):
    return ((x + m - 1) // m) * m


def _softplus(x):
    # Matches torch.nn.Softplus(beta=1, threshold=20): linear above the threshold.
    return jnp.where(x > 20.0, x, jnp.log1p(jnp.exp(jnp.minimum(x, 20.0))))


def _fused_kernel(xc_ref, xs_ref, w1c_ref, w1s_ref, b1_ref,
                  w2_ref, b2_ref, w3_ref, b3_ref, out_ref):
    """Feature-major fused forward: the batch lives on the 128-lane axis.

    xc_ref: (in_cpu, T)   xs_ref: (in_scr, T)   out_ref: (3, T)
    Weights are pre-transposed / block-diagonal (built once in the wrapper), so the
    two heads run as three fused matmuls; results are bit-exact vs. separate heads.
    """
    # Layer 1: split over the two input streams (zeros in the off-diagonal blocks).
    h = (jnp.dot(w1c_ref[...], xc_ref[...], preferred_element_type=jnp.float32)
         + jnp.dot(w1s_ref[...], xs_ref[...], preferred_element_type=jnp.float32)
         + b1_ref[...])                                                    # (H1, T)
    h = jnp.maximum(h, 0.0)
    # Layer 2: fused block-diagonal (H2, H1) weight — a single MXU weight panel.
    h = jnp.dot(w2_ref[...], h, preferred_element_type=jnp.float32) + b2_ref[...]
    h = jnp.maximum(h, 0.0)                                                # (H2, T)
    # Layer 3: (2, H2) — row 0 = cpu head, row 1 = screen head.
    z = jnp.dot(w3_ref[...], h, preferred_element_type=jnp.float32) + b3_ref[...]
    e = _softplus(z)                                                       # (2, T)
    out_ref[0:2, :] = e
    out_ref[2:3, :] = e[0:1, :] + e[1:2, :]          # e_tot computed in-kernel


def _fuse_params(p):
    """Fold the two heads into transposed block-diagonal weights (exact, zero-filled)."""
    w1c, w1s = p["w1c"], p["w1s"]
    w2c, w2s = p["w2c"], p["w2s"]
    w3c, w3s = p["w3c"], p["w3s"]
    in_cpu, h1c = w1c.shape
    in_scr, h1s = w1s.shape
    h2c, h2s = w2c.shape[1], w2s.shape[1]
    H1, H2 = h1c + h1s, h2c + h2s
    f32 = jnp.float32

    W1cT = jnp.zeros((H1, in_cpu), f32).at[:h1c, :].set(w1c.T)
    W1sT = jnp.zeros((H1, in_scr), f32).at[h1c:, :].set(w1s.T)
    b1T = jnp.concatenate([p["b1c"], p["b1s"]], axis=1).T                  # (H1, 1)
    W2T = (jnp.zeros((H2, H1), f32)
           .at[:h2c, :h1c].set(w2c.T)
           .at[h2c:, h1c:].set(w2s.T))
    b2T = jnp.concatenate([p["b2c"], p["b2s"]], axis=1).T                  # (H2, 1)
    W3T = (jnp.zeros((2, H2), f32)
           .at[0:1, :h2c].set(w3c.T)
           .at[1:2, h2c:].set(w3s.T))
    b3T = jnp.concatenate([p["b3c"], p["b3s"]], axis=1).T                  # (2, 1)
    return W1cT, W1sT, b1T, W2T, b2T, W3T, b3T


def _pick_tile(B, tile_b):
    """Choose a 128-aligned batch tile; ensure >= 2 tiles for megacore when B is large."""
    tile_b = max(128, _round_up(int(tile_b), 128))
    if B <= 256:
        return B, 1                       # one full block (lane dim == array dim: legal)
    t = min(tile_b, _round_up(-(-B // 2), 128))
    return t, -(-B // t)


def _forward(xc_t, xs_t, fused, tile, grid, buffered):
    W1cT, W1sT, b1T, W2T, b2T, W3T, b3T = fused
    in_cpu, B = xc_t.shape
    in_scr = xs_t.shape[0]
    H1, H2 = W1cT.shape[0], W2T.shape[0]

    def _resident(shape):
        # Constant index map -> block never changes; single buffer is enough.
        if buffered:
            return pl.BlockSpec(shape, lambda i: (0, 0), pipeline_mode=pl.Buffered(1))
        return pl.BlockSpec(shape, lambda i: (0, 0))

    weight_elems = H1 * (in_cpu + in_scr) + H1 + H2 * H1 + H2 + 2 * H2 + 2
    cost = pl.CostEstimate(
        flops=2 * B * ((in_cpu + in_scr) * H1 + H1 * H2 + H2 * 2),
        transcendentals=4 * B,                      # exp + log1p for each of 2 heads
        bytes_accessed=4 * (B * (in_cpu + in_scr + 3) + weight_elems),
    )

    return pl.pallas_call(
        _fused_kernel,
        out_shape=jax.ShapeDtypeStruct((3, B), jnp.float32),
        grid_spec=pl.GridSpec(
            grid=(grid,),
            in_specs=[
                pl.BlockSpec((in_cpu, tile), lambda i: (0, i)),   # x_cpu^T (tiled)
                pl.BlockSpec((in_scr, tile), lambda i: (0, i)),   # x_scr^T (tiled)
                _resident((H1, in_cpu)),                          # W1c^T   (resident)
                _resident((H1, in_scr)),                          # W1s^T
                _resident((H1, 1)),                               # b1
                _resident((H2, H1)),                              # W2^T (block-diag)
                _resident((H2, 1)),                               # b2
                _resident((2, H2)),                               # W3^T
                _resident((2, 1)),                                # b3
            ],
            out_specs=pl.BlockSpec((3, tile), lambda i: (0, i)),  # [e_cpu; e_scr; e_tot]
        ),
        compiler_params=pltpu.CompilerParams(dimension_semantics=("parallel",)),
        cost_estimate=cost,
    )(xc_t, xs_t, W1cT, W1sT, b1T, W2T, b2T, W3T, b3T)


def two_head_net(x_cpu, x_scr, params, tile_b=4096):
    """Forward pass of TwoHeadNet (eval mode: dropout = identity).

    x_cpu: (B, in_cpu) f32, x_scr: (B, in_scr) f32.
    Returns (e_cpu, e_scr, e_cpu + e_scr), each (B, 1) float32.
    """
    B = x_cpu.shape[0]
    fused = _fuse_params(params)

    # Lane-dense (feature-major) layout: batch on the 128-lane axis. Callers that
    # already hold feature-major data can pass it directly and skip the transpose.
    xc_t = jnp.asarray(x_cpu, jnp.float32).T          # (in_cpu, B)
    xs_t = jnp.asarray(x_scr, jnp.float32).T          # (in_scr, B)

    tile, grid = _pick_tile(B, tile_b)

    buffered = hasattr(pl, "Buffered")
    try:
        out = _forward(xc_t, xs_t, fused, tile, grid, buffered)
    except Exception:
        if not buffered:
            raise
        # Fallback if this jax build rejects pipeline_mode=Buffered(1) on resident specs.
        out = _forward(xc_t, xs_t, fused, tile, grid, False)

    e_cpu = out[0, :, None]
    e_scr = out[1, :, None]
    e_tot = out[2, :, None]
    return e_cpu, e_scr, e_tot


def init_params(key, in_cpu=6, in_scr=4, hidden=128):
    """PyTorch-Linear-style uniform(-1/sqrt(fan_in), 1/sqrt(fan_in)) init.
    Weights stored transposed: (in, out). Biases: (1, out)."""
    dims_cpu = [(in_cpu, hidden), (hidden, hidden // 2), (hidden // 2, 1)]
    dims_scr = [(in_scr, hidden // 2), (hidden // 2, hidden // 4), (hidden // 4, 1)]
    params = {}
    keys = jax.random.split(key, 12)
    k = 0
    for tag, dims in (("c", dims_cpu), ("s", dims_scr)):
        for li, (fan_in, fan_out) in enumerate(dims, start=1):
            bound = 1.0 / jnp.sqrt(float(fan_in))
            params[f"w{li}{tag}"] = jax.random.uniform(
                keys[k], (fan_in, fan_out), jnp.float32, -bound, bound)
            k += 1
            params[f"b{li}{tag}"] = jax.random.uniform(
                keys[k], (1, fan_out), jnp.float32, -bound, bound)
            k += 1
    return params


def _reference(x_cpu, x_scr, p):
    def head(x, w1, b1, w2, b2, w3, b3):
        h = jnp.maximum(x @ w1 + b1, 0.0)
        h = jnp.maximum(h @ w2 + b2, 0.0)
        h = h @ w3 + b3
        return jnp.where(h > 20.0, h, jnp.log1p(jnp.exp(jnp.minimum(h, 20.0))))
    ec = head(x_cpu, p["w1c"], p["b1c"], p["w2c"], p["b2c"], p["w3c"], p["b3c"])
    es = head(x_scr, p["w1s"], p["b1s"], p["w2s"], p["b2s"], p["w3s"], p["b3s"])
    return ec, es, ec + es


if __name__ == "__main__":
    key = jax.random.PRNGKey(0)
    k_params, k_xc, k_xs = jax.random.split(key, 3)

    B, IN_CPU, IN_SCR, HIDDEN = 8, 6, 4, 128
    params = init_params(k_params, IN_CPU, IN_SCR, HIDDEN)
    x_cpu = jax.random.normal(k_xc, (B, IN_CPU), jnp.float32)
    x_scr = jax.random.normal(k_xs, (B, IN_SCR), jnp.float32)

    e_cpu, e_scr, e_tot = jax.block_until_ready(two_head_net(x_cpu, x_scr, params))

    r_cpu, r_scr, r_tot = _reference(x_cpu, x_scr, params)
    assert jnp.allclose(e_cpu, r_cpu, atol=1e-5, rtol=1e-5)
    assert jnp.allclose(e_scr, r_scr, atol=1e-5, rtol=1e-5)
    assert jnp.allclose(e_tot, r_tot, atol=1e-5, rtol=1e-5)

    # Larger, non-multiple-of-tile batch: exercises the 2-tile grid ("parallel" axis)
    # and the masked partial trailing block (no host-side padding anymore).
    B2 = 2050
    kx2, ks2 = jax.random.split(k_xc)
    xc2 = jax.random.normal(kx2, (B2, IN_CPU), jnp.float32)
    xs2 = jax.random.normal(ks2, (B2, IN_SCR), jnp.float32)
    o2 = jax.block_until_ready(two_head_net(xc2, xs2, params, tile_b=4096))
    r2 = _reference(xc2, xs2, params)
    for a, b in zip(o2, r2):
        assert jnp.allclose(a, b, atol=1e-5, rtol=1e-5)

    print("KERNEL_OK")
</pallas_src>

<mosaic_0001>
module attributes {stable_mosaic.version = 11 : i64} {
  func.func @_fused_kernel(%arg0: i32, %arg1: memref<6x8xf32, #tpu.memory_space<vmem>>, %arg2: memref<4x8xf32, #tpu.memory_space<vmem>>, %arg3: memref<192x6xf32, #tpu.memory_space<vmem>>, %arg4: memref<192x4xf32, #tpu.memory_space<vmem>>, %arg5: memref<192x1xf32, #tpu.memory_space<vmem>>, %arg6: memref<96x192xf32, #tpu.memory_space<vmem>>, %arg7: memref<96x1xf32, #tpu.memory_space<vmem>>, %arg8: memref<2x96xf32, #tpu.memory_space<vmem>>, %arg9: memref<2x1xf32, #tpu.memory_space<vmem>>, %arg10: memref<3x8xf32, #tpu.memory_space<vmem>>) attributes {dimension_semantics = [#tpu.dimension_semantics<parallel>], iteration_bounds = array<i64: 1>, scalar_prefetch = 0 : i64, scratch_operands = 0 : i64, tpu.core_type = #tpu.core_type<tc>, window_params = [{transform_indices = @transform_0, window_bounds = array<i64: 6, 8>}, {transform_indices = @transform_1, window_bounds = array<i64: 4, 8>}, {pipeline_mode = #tpu.pipeline_mode<synchronous>, transform_indices = @transform_2, window_bounds = array<i64: 192, 6>}, {pipeline_mode = #tpu.pipeline_mode<synchronous>, transform_indices = @transform_3, window_bounds = array<i64: 192, 4>}, {pipeline_mode = #tpu.pipeline_mode<synchronous>, transform_indices = @transform_4, window_bounds = array<i64: 192, 1>}, {pipeline_mode = #tpu.pipeline_mode<synchronous>, transform_indices = @transform_5, window_bounds = array<i64: 96, 192>}, {pipeline_mode = #tpu.pipeline_mode<synchronous>, transform_indices = @transform_6, window_bounds = array<i64: 96, 1>}, {pipeline_mode = #tpu.pipeline_mode<synchronous>, transform_indices = @transform_7, window_bounds = array<i64: 2, 96>}, {pipeline_mode = #tpu.pipeline_mode<synchronous>, transform_indices = @transform_8, window_bounds = array<i64: 2, 1>}, {transform_indices = @transform_9, window_bounds = array<i64: 3, 8>}]} {
    %c0 = arith.constant 0 : index
    %c0_0 = arith.constant 0 : index
    %0 = vector.load %arg3[%c0, %c0_0] : memref<192x6xf32, #tpu.memory_space<vmem>>, vector<192x6xf32>
    %c0_1 = arith.constant 0 : index
    %c0_2 = arith.constant 0 : index
    %1 = vector.load %arg1[%c0_1, %c0_2] : memref<6x8xf32, #tpu.memory_space<vmem>>, vector<6x8xf32>
    %cst = arith.constant dense<0.000000e+00> : vector<192x8xf32>
    %2 = tpu.matmul %0, %1, %cst {dimension_numbers = #tpu.dot_dimension_numbers<[1], [0], [0], [1], [0, 0, 1, 1], [], []>} : vector<192x6xf32>, vector<6x8xf32>, vector<192x8xf32> -> vector<192x8xf32>
    %c0_3 = arith.constant 0 : index
    %c0_4 = arith.constant 0 : index
    %3 = vector.load %arg4[%c0_3, %c0_4] : memref<192x4xf32, #tpu.memory_space<vmem>>, vector<192x4xf32>
    %c0_5 = arith.constant 0 : index
    %c0_6 = arith.constant 0 : index
    %4 = vector.load %arg2[%c0_5, %c0_6] : memref<4x8xf32, #tpu.memory_space<vmem>>, vector<4x8xf32>
    %cst_7 = arith.constant dense<0.000000e+00> : vector<192x8xf32>
    %5 = tpu.matmul %3, %4, %cst_7 {dimension_numbers = #tpu.dot_dimension_numbers<[1], [0], [0], [1], [0, 0, 1, 1], [], []>} : vector<192x4xf32>, vector<4x8xf32>, vector<192x8xf32> -> vector<192x8xf32>
    %6 = arith.addf %2, %5 : vector<192x8xf32>
    %c0_8 = arith.constant 0 : index
    %c0_9 = arith.constant 0 : index
    %7 = vector.load %arg5[%c0_8, %c0_9] : memref<192x1xf32, #tpu.memory_space<vmem>>, vector<192x1xf32>
    %8 = vector.broadcast %7 : vector<192x1xf32> to vector<192x8xf32>
    %9 = arith.addf %6, %8 : vector<192x8xf32>
    %cst_10 = arith.constant 0.000000e+00 : f32
    %10 = vector.broadcast %cst_10 : f32 to vector<192x8xf32>
    %11 = arith.maximumf %9, %10 : vector<192x8xf32>
    %c0_11 = arith.constant 0 : index
    %c0_12 = arith.constant 0 : index
    %12 = vector.load %arg6[%c0_11, %c0_12] : memref<96x192xf32, #tpu.memory_space<vmem>>, vector<96x192xf32>
    %cst_13 = arith.constant dense<0.000000e+00> : vector<96x8xf32>
    %13 = tpu.matmul %12, %11, %cst_13 {dimension_numbers = #tpu.dot_dimension_numbers<[1], [0], [0], [1], [0, 0, 1, 1], [], []>} : vector<96x192xf32>, vector<192x8xf32>, vector<96x8xf32> -> vector<96x8xf32>
    %c0_14 = arith.constant 0 : index
    %c0_15 = arith.constant 0 : index
    %14 = vector.load %arg7[%c0_14, %c0_15] : memref<96x1xf32, #tpu.memory_space<vmem>>, vector<96x1xf32>
    %15 = vector.broadcast %14 : vector<96x1xf32> to vector<96x8xf32>
    %16 = arith.addf %13, %15 : vector<96x8xf32>
    %cst_16 = arith.constant 0.000000e+00 : f32
    %17 = vector.broadcast %cst_16 : f32 to vector<96x8xf32>
    %18 = arith.maximumf %16, %17 : vector<96x8xf32>
    %c0_17 = arith.constant 0 : index
    %c0_18 = arith.constant 0 : index
    %19 = vector.load %arg8[%c0_17, %c0_18] : memref<2x96xf32, #tpu.memory_space<vmem>>, vector<2x96xf32>
    %cst_19 = arith.constant dense<0.000000e+00> : vector<2x8xf32>
    %20 = tpu.matmul %19, %18, %cst_19 {dimension_numbers = #tpu.dot_dimension_numbers<[1], [0], [0], [1], [0, 0, 1, 1], [], []>} : vector<2x96xf32>, vector<96x8xf32>, vector<2x8xf32> -> vector<2x8xf32>
    %c0_20 = arith.constant 0 : index
    %c0_21 = arith.constant 0 : index
    %21 = vector.load %arg9[%c0_20, %c0_21] : memref<2x1xf32, #tpu.memory_space<vmem>>, vector<2x1xf32>
    %22 = vector.broadcast %21 : vector<2x1xf32> to vector<2x8xf32>
    %23 = arith.addf %20, %22 : vector<2x8xf32>
    %cst_22 = arith.constant 2.000000e+01 : f32
    %24 = vector.broadcast %cst_22 : f32 to vector<2x8xf32>
    %25 = arith.cmpf ogt, %23, %24 : vector<2x8xf32>
    %cst_23 = arith.constant 2.000000e+01 : f32
    %26 = vector.broadcast %cst_23 : f32 to vector<2x8xf32>
    %27 = arith.minimumf %23, %26 : vector<2x8xf32>
    %28 = math.exp %27 : vector<2x8xf32>
    %29 = math.log1p %28 : vector<2x8xf32>
    %30 = arith.select %25, %23, %29 : vector<2x8xi1>, vector<2x8xf32>
    %c0_24 = arith.constant 0 : index
    %c0_25 = arith.constant 0 : index
    %31 = vector.load %arg10[%c0_24, %c0_25] : memref<3x8xf32, #tpu.memory_space<vmem>>, vector<2x8xf32>
    tpu.vector_store %arg10[%c0_24, %c0_25], %30 {strides = array<i32>} : memref<3x8xf32, #tpu.memory_space<vmem>>, vector<2x8xf32>,
    %32 = vector.extract_strided_slice %30 {offsets = [0, 0], sizes = [1, 8], strides = [1, 1]} : vector<2x8xf32> to vector<1x8xf32>
    %33 = vector.extract_strided_slice %30 {offsets = [1, 0], sizes = [1, 8], strides = [1, 1]} : vector<2x8xf32> to vector<1x8xf32>
    %34 = arith.addf %32, %33 : vector<1x8xf32>
    %c2 = arith.constant 2 : index
    %c0_26 = arith.constant 0 : index
    %35 = vector.load %arg10[%c2, %c0_26] : memref<3x8xf32, #tpu.memory_space<vmem>>, vector<1x8xf32>
    tpu.vector_store %arg10[%c2, %c0_26], %34 {strides = array<i32>} : memref<3x8xf32, #tpu.memory_space<vmem>>, vector<1x8xf32>,
    return
  }
  func.func @transform_0(%arg0: i32) -> (i32, i32) {
    %c0_i32 = arith.constant 0 : i32
    %c0_i32_0 = arith.constant 0 : i32
    return %c0_i32, %arg0 : i32, i32
  }
  func.func @transform_1(%arg0: i32) -> (i32, i32) {
    %c0_i32 = arith.constant 0 : i32
    %c0_i32_0 = arith.constant 0 : i32
    return %c0_i32, %arg0 : i32, i32
  }
  func.func @transform_2(%arg0: i32) -> (i32, i32) {
    %c0_i32 = arith.constant 0 : i32
    %c0_i32_0 = arith.constant 0 : i32
    %c0_i32_1 = arith.constant 0 : i32
    return %c0_i32, %c0_i32_0 : i32, i32
  }
  func.func @transform_3(%arg0: i32) -> (i32, i32) {
    %c0_i32 = arith.constant 0 : i32
    %c0_i32_0 = arith.constant 0 : i32
    %c0_i32_1 = arith.constant 0 : i32
    return %c0_i32, %c0_i32_0 : i32, i32
  }
  func.func @transform_4(%arg0: i32) -> (i32, i32) {
    %c0_i32 = arith.constant 0 : i32
    %c0_i32_0 = arith.constant 0 : i32
    %c0_i32_1 = arith.constant 0 : i32
    return %c0_i32, %c0_i32_0 : i32, i32
  }
  func.func @transform_5(%arg0: i32) -> (i32, i32) {
    %c0_i32 = arith.constant 0 : i32
    %c0_i32_0 = arith.constant 0 : i32
    %c0_i32_1 = arith.constant 0 : i32
    return %c0_i32, %c0_i32_0 : i32, i32
  }
  func.func @transform_6(%arg0: i32) -> (i32, i32) {
    %c0_i32 = arith.constant 0 : i32
    %c0_i32_0 = arith.constant 0 : i32
    %c0_i32_1 = arith.constant 0 : i32
    return %c0_i32, %c0_i32_0 : i32, i32
  }
  func.func @transform_7(%arg0: i32) -> (i32, i32) {
    %c0_i32 = arith.constant 0 : i32
    %c0_i32_0 = arith.constant 0 : i32
    %c0_i32_1 = arith.constant 0 : i32
    return %c0_i32, %c0_i32_0 : i32, i32
  }
  func.func @transform_8(%arg0: i32) -> (i32, i32) {
    %c0_i32 = arith.constant 0 : i32
    %c0_i32_0 = arith.constant 0 : i32
    %c0_i32_1 = arith.constant 0 : i32
    return %c0_i32, %c0_i32_0 : i32, i32
  }
  func.func @transform_9(%arg0: i32) -> (i32, i32) {
    %c0_i32 = arith.constant 0 : i32
    %c0_i32_0 = arith.constant 0 : i32
    return %c0_i32, %arg0 : i32, i32
  }
}

module attributes {stable_mosaic.version = 11 : i64} {
  func.func @_fused_kernel(%arg0: i32, %arg1: memref<6x8xf32, #tpu.memory_space<vmem>>, %arg2: memref<4x8xf32, #tpu.memory_space<vmem>>, %arg3: memref<192x6xf32, #tpu.memory_space<vmem>>, %arg4: memref<192x4xf32, #tpu.memory_space<vmem>>, %arg5: memref<192x1xf32, #tpu.memory_space<vmem>>, %arg6: memref<96x192xf32, #tpu.memory_space<vmem>>, %arg7: memref<96x1xf32, #tpu.memory_space<vmem>>, %arg8: memref<2x96xf32, #tpu.memory_space<vmem>>, %arg9: memref<2x1xf32, #tpu.memory_space<vmem>>, %arg10: memref<3x8xf32, #tpu.memory_space<vmem>>) attributes {dimension_semantics = [#tpu.dimension_semantics<parallel>], iteration_bounds = array<i64: 1>, scalar_prefetch = 0 : i64, scratch_operands = 0 : i64, tpu.core_type = #tpu.core_type<tc>, window_params = [{transform_indices = @transform_0, window_bounds = array<i64: 6, 8>}, {transform_indices = @transform_1, window_bounds = array<i64: 4, 8>}, {pipeline_mode = #tpu.pipeline_mode<synchronous>, transform_indices = @transform_2, window_bounds = array<i64: 192, 6>}, {pipeline_mode = #tpu.pipeline_mode<synchronous>, transform_indices = @transform_3, window_bounds = array<i64: 192, 4>}, {pipeline_mode = #tpu.pipeline_mode<synchronous>, transform_indices = @transform_4, window_bounds = array<i64: 192, 1>}, {pipeline_mode = #tpu.pipeline_mode<synchronous>, transform_indices = @transform_5, window_bounds = array<i64: 96, 192>}, {pipeline_mode = #tpu.pipeline_mode<synchronous>, transform_indices = @transform_6, window_bounds = array<i64: 96, 1>}, {pipeline_mode = #tpu.pipeline_mode<synchronous>, transform_indices = @transform_7, window_bounds = array<i64: 2, 96>}, {pipeline_mode = #tpu.pipeline_mode<synchronous>, transform_indices = @transform_8, window_bounds = array<i64: 2, 1>}, {transform_indices = @transform_9, window_bounds = array<i64: 3, 8>}]} {
    %c0 = arith.constant 0 : index
    %c0_0 = arith.constant 0 : index
    %0 = vector.load %arg3[%c0, %c0_0] : memref<192x6xf32, #tpu.memory_space<vmem>>, vector<192x6xf32>
    %c0_1 = arith.constant 0 : index
    %c0_2 = arith.constant 0 : index
    %1 = vector.load %arg1[%c0_1, %c0_2] : memref<6x8xf32, #tpu.memory_space<vmem>>, vector<6x8xf32>
    %cst = arith.constant dense<0.000000e+00> : vector<192x8xf32>
    %2 = tpu.matmul %0, %1, %cst {dimension_numbers = #tpu.dot_dimension_numbers<[1], [0], [0], [1], [0, 0, 1, 1], [], []>} : vector<192x6xf32>, vector<6x8xf32>, vector<192x8xf32> -> vector<192x8xf32>
    %c0_3 = arith.constant 0 : index
    %c0_4 = arith.constant 0 : index
    %3 = vector.load %arg4[%c0_3, %c0_4] : memref<192x4xf32, #tpu.memory_space<vmem>>, vector<192x4xf32>
    %c0_5 = arith.constant 0 : index
    %c0_6 = arith.constant 0 : index
    %4 = vector.load %arg2[%c0_5, %c0_6] : memref<4x8xf32, #tpu.memory_space<vmem>>, vector<4x8xf32>
    %cst_7 = arith.constant dense<0.000000e+00> : vector<192x8xf32>
    %5 = tpu.matmul %3, %4, %cst_7 {dimension_numbers = #tpu.dot_dimension_numbers<[1], [0], [0], [1], [0, 0, 1, 1], [], []>} : vector<192x4xf32>, vector<4x8xf32>, vector<192x8xf32> -> vector<192x8xf32>
    %6 = arith.addf %2, %5 : vector<192x8xf32>
    %c0_8 = arith.constant 0 : index
    %c0_9 = arith.constant 0 : index
    %7 = vector.load %arg5[%c0_8, %c0_9] : memref<192x1xf32, #tpu.memory_space<vmem>>, vector<192x1xf32>
    %8 = vector.broadcast %7 : vector<192x1xf32> to vector<192x8xf32>
    %9 = arith.addf %6, %8 : vector<192x8xf32>
    %cst_10 = arith.constant 0.000000e+00 : f32
    %10 = vector.broadcast %cst_10 : f32 to vector<192x8xf32>
    %11 = arith.maximumf %9, %10 : vector<192x8xf32>
    %c0_11 = arith.constant 0 : index
    %c0_12 = arith.constant 0 : index
    %12 = vector.load %arg6[%c0_11, %c0_12] : memref<96x192xf32, #tpu.memory_space<vmem>>, vector<96x192xf32>
    %cst_13 = arith.constant dense<0.000000e+00> : vector<96x8xf32>
    %13 = tpu.matmul %12, %11, %cst_13 {dimension_numbers = #tpu.dot_dimension_numbers<[1], [0], [0], [1], [0, 0, 1, 1], [], []>} : vector<96x192xf32>, vector<192x8xf32>, vector<96x8xf32> -> vector<96x8xf32>
    %c0_14 = arith.constant 0 : index
    %c0_15 = arith.constant 0 : index
    %14 = vector.load %arg7[%c0_14, %c0_15] : memref<96x1xf32, #tpu.memory_space<vmem>>, vector<96x1xf32>
    %15 = vector.broadcast %14 : vector<96x1xf32> to vector<96x8xf32>
    %16 = arith.addf %13, %15 : vector<96x8xf32>
    %cst_16 = arith.constant 0.000000e+00 : f32
    %17 = vector.broadcast %cst_16 : f32 to vector<96x8xf32>
    %18 = arith.maximumf %16, %17 : vector<96x8xf32>
    %c0_17 = arith.constant 0 : index
    %c0_18 = arith.constant 0 : index
    %19 = vector.load %arg8[%c0_17, %c0_18] : memref<2x96xf32, #tpu.memory_space<vmem>>, vector<2x96xf32>
    %cst_19 = arith.constant dense<0.000000e+00> : vector<2x8xf32>
    %20 = tpu.matmul %19, %18, %cst_19 {dimension_numbers = #tpu.dot_dimension_numbers<[1], [0], [0], [1], [0, 0, 1, 1], [], []>} : vector<2x96xf32>, vector<96x8xf32>, vector<2x8xf32> -> vector<2x8xf32>
    %c0_20 = arith.constant 0 : index
    %c0_21 = arith.constant 0 : index
    %21 = vector.load %arg9[%c0_20, %c0_21] : memref<2x1xf32, #tpu.memory_space<vmem>>, vector<2x1xf32>
    %22 = vector.broadcast %21 : vector<2x1xf32> to vector<2x8xf32>
    %23 = arith.addf %20, %22 : vector<2x8xf32>
    %cst_22 = arith.constant 2.000000e+01 : f32
    %24 = vector.broadcast %cst_22 : f32 to vector<2x8xf32>
    %25 = arith.cmpf ogt, %23, %24 : vector<2x8xf32>
    %cst_23 = arith.constant 2.000000e+01 : f32
    %26 = vector.broadcast %cst_23 : f32 to vector<2x8xf32>
    %27 = arith.minimumf %23, %26 : vector<2x8xf32>
    %28 = math.exp %27 : vector<2x8xf32>
    %29 = math.log1p %28 : vector<2x8xf32>
    %30 = arith.select %25, %23, %29 : vector<2x8xi1>, vector<2x8xf32>
    %c0_24 = arith.constant 0 : index
    %c0_25 = arith.constant 0 : index
    %31 = vector.load %arg10[%c0_24, %c0_25] : memref<3x8xf32, #tpu.memory_space<vmem>>, vector<2x8xf32>
    tpu.vector_store %arg10[%c0_24, %c0_25], %30 {strides = array<i32>} : memref<3x8xf32, #tpu.memory_space<vmem>>, vector<2x8xf32>,
    %32 = vector.extract_strided_slice %30 {offsets = [0, 0], sizes = [1, 8], strides = [1, 1]} : vector<2x8xf32> to vector<1x8xf32>
    %33 = vector.extract_strided_slice %30 {offsets = [1, 0], sizes = [1, 8], strides = [1, 1]} : vector<2x8xf32> to vector<1x8xf32>
    %34 = arith.addf %32, %33 : vector<1x8xf32>
    %c2 = arith.constant 2 : index
    %c0_26 = arith.constant 0 : index
    %35 = vector.load %arg10[%c2, %c0_26] : memref<3x8xf32, #tpu.memory_space<vmem>>, vector<1x8xf32>
    tpu.vector_store %arg10[%c2, %c0_26], %34 {strides = array<i32>} : memref<3x8xf32, #tpu.memory_space<vmem>>, vector<1x8xf32>,
    return
  }
  func.func @transform_0(%arg0: i32) -> (i32, i32) {
    %c0_i32 = arith.constant 0 : i32
    %c0_i32_0 = arith.constant 0 : i32
    return %c0_i32, %arg0 : i32, i32
  }
  func.func @transform_1(%arg0: i32) -> (i32, i32) {
    %c0_i32 = arith.constant 0 : i32
    %c0_i32_0 = arith.constant 0 : i32
    return %c0_i32, %arg0 : i32, i32
  }
  func.func @transform_2(%arg0: i32) -> (i32, i32) {
    %c0_i32 = arith.constant 0 : i32
    %c0_i32_0 = arith.constant 0 : i32
    %c0_i32_1 = arith.constant 0 : i32
    return %c0_i32, %c0_i32_0 : i32, i32
  }
  func.func @transform_3(%arg0: i32) -> (i32, i32) {
    %c0_i32 = arith.constant 0 : i32
    %c0_i32_0 = arith.constant 0 : i32
    %c0_i32_1 = arith.constant 0 : i32
    return %c0_i32, %c0_i32_0 : i32, i32
  }
  func.func @transform_4(%arg0: i32) -> (i32, i32) {
    %c0_i32 = arith.constant 0 : i32
    %c0_i32_0 = arith.constant 0 : i32
    %c0_i32_1 = arith.constant 0 : i32
    return %c0_i32, %c0_i32_0 : i32, i32
  }
  func.func @transform_5(%arg0: i32) -> (i32, i32) {
    %c0_i32 = arith.constant 0 : i32
    %c0_i32_0 = arith.constant 0 : i32
    %c0_i32_1 = arith.constant 0 : i32
    return %c0_i32, %c0_i32_0 : i32, i32
  }
  func.func @transform_6(%arg0: i32) -> (i32, i32) {
    %c0_i32 = arith.constant 0 : i32
    %c0_i32_0 = arith.constant 0 : i32
    %c0_i32_1 = arith.constant 0 : i32
    return %c0_i32, %c0_i32_0 : i32, i32
  }
  func.func @transform_7(%arg0: i32) -> (i32, i32) {
    %c0_i32 = arith.constant 0 : i32
    %c0_i32_0 = arith.constant 0 : i32
    %c0_i32_1 = arith.constant 0 : i32
    return %c0_i32, %c0_i32_0 : i32, i32
  }
  func.func @transform_8(%arg0: i32) -> (i32, i32) {
    %c0_i32 = arith.constant 0 : i32
    %c0_i32_0 = arith.constant 0 : i32
    %c0_i32_1 = arith.constant 0 : i32
    return %c0_i32, %c0_i32_0 : i32, i32
  }
  func.func @transform_9(%arg0: i32) -> (i32, i32) {
    %c0_i32 = arith.constant 0 : i32
    %c0_i32_0 = arith.constant 0 : i32
    return %c0_i32, %arg0 : i32, i32
  }
}

</mosaic_0001>

<bundles_post_ra>
// kernel: tpu_custom_call.1
= control target key start
LH: loop header
LB: loop body
LE: loop exit
PB: predicated region body
PF: predicated region fallthrough
CT: control target
= control target key end

     0   :  { %vm156_vm0 = vcmask 1043456   ;;  %v1028_v2 = vmov 0   ;;  %vm322_vm1 = vcmask 1045504   ;;  %vm83_vm2 = vcmask 31744   ;;  %s1541_s0 = inlined_call_operand.vmem [shape: f32[6,8], index: 0, kind: input, shape index: {}]   ;;  %s1542_s1 = inlined_call_operand.vmem [shape: f32[4,8], index: 1, kind: input, shape index: {}]   ;;  %s1543_s2 = inlined_call_operand.vmem [shape: f32[192,6], index: 2, kind: input, shape index: {}]   ;;  %s1544_s3 = inlined_call_operand.vmem [shape: f32[192,4], index: 3, kind: input, shape index: {}]   ;;  %s1545_s4 = inlined_call_operand.vmem [shape: f32[192,1], index: 4, kind: input, shape index: {}]   ;;  %s1546_s5 = inlined_call_operand.vmem [shape: f32[96,192], index: 5, kind: input, shape index: {}]   ;;  %s1547_s6 = inlined_call_operand.vmem [shape: f32[96,1], index: 6, kind: input, shape index: {}]   ;;  %s1548_s7 = inlined_call_operand.vmem [shape: f32[2,96], index: 7, kind: input, shape index: {}]   ;;  %s1549_s8 = inlined_call_operand.vmem [shape: f32[2,1], index: 8, kind: input, shape index: {}]   ;;  %s1550_s9 = inlined_call_operand.hbm [shape: f32[3,8], index: 9, kind: output, shape index: {}]  }
   0x1   :  { %v82_v0 = vld [vmem:[%s1542_s1] sm:$0xf]  ;;  %996 = vset.pattern.permute.xlu1 %v1028_v2  ;;  %995 = vset.pattern.permute.xlu0 %v1028_v2  ;;  %v430_v3 = vld [vmem:[%s1545_s4 + $0x78] sm:$0xff]  ;;  %v428_v4 = vld [vmem:[%s1545_s4 + $0x68] sm:$0xff]  ;;  %vm249_vm3 = vcmask 48128  }
   0x2   :  { %v57_v1 = vld [vmem:[%s1541_s0] sm:$0x3f]  ;;  %927 = vmatpush.msk.msra.mxu0 %vm156_vm0, %v82_v0  ;;  %516 = vperm.xlu0 %995, %v430_v3   ;;  %v426_v7 = vld [vmem:[%s1545_s4 + $0x58] sm:$0xff]  ;;  %v429_v8 = vld [vmem:[%s1545_s4 + $0x70] sm:$0xff] }
   0x3   :  { %v58_v5 = vld [vmem:[%s1544_s3] sm:$0xff]  ;;  %952 = vmatpush.msk.msra.mxu1 %vm322_vm1, %v57_v1  ;;  %506 = vperm.xlu1 %996, %v428_v4   ;;  %v59_v10 = vld [vmem:[%s1544_s3 + $0x8] sm:$0xff] }
   0x4   :  { %v33_v6 = vld [vmem:[%s1543_s2] sm:$0xff]  ;;  %928 = vmatmul.msk.f32.vlgmr.msra.gmra.mxu0 %vm83_vm2, %v58_v5  ;;  %997 = vset.pattern.permute.xlu2 %v1028_v2  ;;  %v34_v11 = vld [vmem:[%s1543_s2 + $0x8] sm:$0xff] }
   0x5   :  { %953 = vmatmul.msk.f32.vlgmr.msra.gmra.mxu1 %vm249_vm3, %v33_v6  ;;  %990 = vmatpush.msk.msra.mxu2 %vm156_vm0, %v82_v0  ;;  %v427_v9 = vld [vmem:[%s1545_s4 + $0x60] sm:$0xff] }
   0x6   :  { %496 = vperm.xlu2 %997, %v426_v7   ;;  %991 = vmatpush.msk.msra.mxu3 %vm156_vm0, %v82_v0 }
   0x7   :  { %992 = vmatpush.msk.msrb.mxu2 %vm322_vm1, %v57_v1 }
   0x8   :  { %14 = vsyncpa [#allocation3], 0  ;;  %v425_v12 = vld [vmem:[%s1545_s4 + $0x50] sm:$0xff]  ;;  %v77_v13 = vld [vmem:[%s1544_s3 + $0x98] sm:$0xff]  ;;  %vm703_vm4 = vcmask 523264   ;;  %vm865_vm5 = vcmask 785408  }
   0x9   :  { %947 = vmatmul.msk.f32.vlgmr.msra.gmra.mxu2 %vm83_vm2, %v77_v13  ;;  %v424_v14 = vld [vmem:[%s1545_s4 + $0x48] sm:$0xff]  ;;  %v423_v15 = vld [vmem:[%s1545_s4 + $0x40] sm:$0xff]  ;;  %v60_v16 = vld [vmem:[%s1544_s3 + $0x10] sm:$0xff]  ;;  %vm903_vm7 = vcmask 58368   ;;  %vm909_vm9 = vcmask 57344  }
   0xa   :  { %511 = vperm.xlu0 %995, %v429_v8   ;;  %v35_v17 = vld [vmem:[%s1543_s2 + $0x10] sm:$0xff]  ;;  %v422_v18 = vld [vmem:[%s1545_s4 + $0x38] sm:$0xff]  ;;  %v420_v24 = vld [vmem:[%s1545_s4 + $0x28] sm:$0xff] }
   0xb   :  { %501 = vperm.xlu1 %996, %v427_v9   ;;  %v52_v19 = vld [vmem:[%s1543_s2 + $0x98] sm:$0xff]  ;;  %v421_v21 = vld [vmem:[%s1545_s4 + $0x30] sm:$0xff]  ;;  %v78_v25 = vld [vmem:[%s1544_s3 + $0xa0] sm:$0xff] }
   0xc   :  { %929 = vmatmul.msk.f32.gmra.mxu0 %vm83_vm2, %v59_v10  ;;  %v438_v20 = vld [vmem:[%s1545_s4 + $0xb8] sm:$0xff]  ;;  %v53_v26 = vld [vmem:[%s1543_s2 + $0xa0] sm:$0xff]  ;;  %948 = vmatmul.msk.f32.vlgmr.msra.gmra.mxu3 %vm83_vm2, %v78_v25  ;;  %v437_v27 = vld [vmem:[%s1545_s4 + $0xb0] sm:$0xff] }
   0xd   :  { %954 = vmatmul.msk.f32.gmra.mxu1 %vm249_vm3, %v34_v11  ;;  %v61_v22 = vld [vmem:[%s1544_s3 + $0x18] sm:$0xff]  ;;  %v419_v28 = vld [vmem:[%s1545_s4 + $0x20] sm:$0xff]  ;;  %v436_v31 = vld [vmem:[%s1545_s4 + $0xa8] sm:$0xff] }
   0xe   :  { %491 = vperm.xlu2 %997, %v425_v12   ;;  %v36_v23 = vld [vmem:[%s1543_s2 + $0x18] sm:$0xff]  ;;  %v62_v29 = vld [vmem:[%s1544_s3 + $0x20] sm:$0xff]  ;;  %v79_v32 = vld [vmem:[%s1544_s3 + $0xa8] sm:$0xff] }
   0xf   :  { %v37_v30 = vld [vmem:[%s1543_s2 + $0x20] sm:$0xff]  ;;  %v54_v33 = vld [vmem:[%s1543_s2 + $0xa8] sm:$0xff]  ;;  %v418_v35 = vld [vmem:[%s1545_s4 + $0x18] sm:$0xff] }
  0x10   :  { %v435_v34 = vld [vmem:[%s1545_s4 + $0xa0] sm:$0xff]  ;;  %v63_v36 = vld [vmem:[%s1544_s3 + $0x28] sm:$0xff]  ;;  %v417_v38 = vld [vmem:[%s1545_s4 + $0x10] sm:$0xff] }
  0x11   :  { %972 = vmatmul.msk.f32.vlgmr.msrb.gmra.mxu2 %vm249_vm3, %v52_v19  ;;  %v38_v37 = vld [vmem:[%s1543_s2 + $0x28] sm:$0xff]  ;;  %v80_v39 = vld [vmem:[%s1544_s3 + $0xb0] sm:$0xff]  ;;  %v434_v41 = vld [vmem:[%s1545_s4 + $0x98] sm:$0xff] }
  0x12   :  { %486 = vperm.xlu0 %995, %v424_v14   ;;  %v55_v40 = vld [vmem:[%s1543_s2 + $0xb0] sm:$0xff]  ;;  %v416_v42 = vld [vmem:[%s1545_s4 + $0x8] sm:$0xff]  ;;  %v81_v45 = vld [vmem:[%s1544_s3 + $0xb8] sm:$0xff] }
  0x13   :  { %481 = vperm.xlu1 %996, %v423_v15   ;;  %v64_v43 = vld [vmem:[%s1544_s3 + $0x30] sm:$0xff]  ;;  %v56_v46 = vld [vmem:[%s1543_s2 + $0xb8] sm:$0xff]  ;;  %v415_v47 = vld [vmem:[%s1545_s4] sm:$0xff] }
  0x14   :  { %930 = vmatmul.msk.f32.gmra.mxu0 %vm83_vm2, %v60_v16  ;;  %949 = vmatmul.msk.f32.gmra.mxu3 %vm83_vm2, %v79_v32  ;;  %v39_v44 = vld [vmem:[%s1543_s2 + $0x30] sm:$0xff]  ;;  %v432_v48 = vld [vmem:[%s1545_s4 + $0x88] sm:$0xff]  ;;  %v65_v49 = vld [vmem:[%s1544_s3 + $0x38] sm:$0xff] }
  0x15   :  { %955 = vmatmul.msk.f32.gmra.mxu1 %vm249_vm3, %v35_v17  ;;  %v40_v50 = vld [vmem:[%s1543_s2 + $0x38] sm:$0xff]  ;;  %v433_v51 = vld [vmem:[%s1545_s4 + $0x90] sm:$0xff]  ;;  %v66_v54 = vld [vmem:[%s1544_s3 + $0x40] sm:$0xff] }
  0x16   :  { %476 = vperm.xlu2 %997, %v422_v18   ;;  %v642_v52 = vld [vmem:[%s1547_s6 + $0x58] sm:$0xff]  ;;  %v641_v53 = vld [vmem:[%s1547_s6 + $0x50] sm:$0xff]  ;;  %v41_v55 = vld [vmem:[%s1543_s2 + $0x40] sm:$0xff] }
  0x17   :  { %v431_v56 = vld [vmem:[%s1545_s4 + $0x80] sm:$0xff]  ;;  %v638_v58 = vld [vmem:[%s1547_s6 + $0x38] sm:$0xff]  ;;  %v67_v59 = vld [vmem:[%s1544_s3 + $0x48] sm:$0xff]  ;;  %s918_s4 = sshll.u32 %s1550_s9, 4  ;;  %s919_s4 = int_to_ptr.hbm [resolvable:$true] %s918_s4 }
  0x18   :  { %v639_v57 = vld [vmem:[%s1547_s6 + $0x40] sm:$0xff]  ;;  %v42_v60 = vld [vmem:[%s1543_s2 + $0x48] sm:$0xff]  ;;  %v68_v0 = vld [vmem:[%s1544_s3 + $0x50] sm:$0xff] }
  0x19   :  { %973 = vmatmul.msk.f32.gmra.mxu2 %vm249_vm3, %v53_v26  ;;  %v640_v61 = vld [vmem:[%s1547_s6 + $0x48] sm:$0xff]  ;;  %v635_v63 = vld [vmem:[%s1547_s6 + $0x20] sm:$0xff]  ;;  %v43_v1 = vld [vmem:[%s1543_s2 + $0x50] sm:$0xff] }
  0x1a   :  { %471 = vperm.xlu0 %995, %v421_v21   ;;  %v636_v62 = vld [vmem:[%s1547_s6 + $0x28] sm:$0xff]  ;;  %v637_v2 = vld [vmem:[%s1547_s6 + $0x30] sm:$0xff]  ;;  %v69_v5 = vld [vmem:[%s1544_s3 + $0x58] sm:$0xff] }
  0x1b   :  { %556 = vperm.xlu1 %996, %v438_v20   ;;  %v633_v3 = vld [vmem:[%s1547_s6 + $0x10] sm:$0xff]  ;;  %v632_v4 = vld [vmem:[%s1547_s6 + $0x8] sm:$0xff]  ;;  %v44_v6 = vld [vmem:[%s1543_s2 + $0x58] sm:$0xff] }
  0x1c   :  { %931 = vmatmul.msk.f32.gmra.mxu0 %vm83_vm2, %v61_v22  ;;  %950 = vmatmul.msk.f32.gmra.mxu3 %vm83_vm2, %v80_v39  ;;  %v634_v7 = vld [vmem:[%s1547_s6 + $0x18] sm:$0xff]  ;;  %v859_v8 = vld [vmem:[%s1549_s8] sm:$0x3]  ;;  %v71_v12 = vld [vmem:[%s1544_s3 + $0x68] sm:$0xff] }
  0x1d   :  { %956 = vmatmul.msk.f32.gmra.mxu1 %vm249_vm3, %v36_v23  ;;  %v70_v9 = vld [vmem:[%s1544_s3 + $0x60] sm:$0xff]  ;;  %v46_v13 = vld [vmem:[%s1543_s2 + $0x68] sm:$0xff]  ;;  %v72_v14 = vld [vmem:[%s1544_s3 + $0x70] sm:$0xff] }
  0x1e   :  { %466 = vperm.xlu2 %997, %v420_v24   ;;  %v45_v10 = vld [vmem:[%s1543_s2 + $0x60] sm:$0xff]  ;;  %v47_v15 = vld [vmem:[%s1543_s2 + $0x70] sm:$0xff]  ;;  %v73_v17 = vld [vmem:[%s1544_s3 + $0x78] sm:$0xff] }
  0x1f   :  { %v631_v11 = vld [vmem:[%s1547_s6] sm:$0xff]  ;;  %v48_v18 = vld [vmem:[%s1543_s2 + $0x78] sm:$0xff]  ;;  %v76_v39 = vld [vmem:[%s1544_s3 + $0x90] sm:$0xff] }
  0x20   :  { %v74_v23 = vld [vmem:[%s1544_s3 + $0x80] sm:$0xff] }
  0x21   :  { %974 = vmatmul.msk.f32.gmra.mxu2 %vm249_vm3, %v54_v33  ;;  %v49_v24 = vld [vmem:[%s1543_s2 + $0x80] sm:$0xff] }
  0x22   :  { %551 = vperm.xlu0 %995, %v437_v27  }
  0x23   :  { %461 = vperm.xlu1 %996, %v419_v28  }
  0x24   :  { %932 = vmatmul.msk.f32.gmra.mxu0 %vm83_vm2, %v62_v29  ;;  %951 = vmatmul.msk.f32.gmra.mxu3 %vm83_vm2, %v81_v45 }
  0x25   :  { %957 = vmatmul.msk.f32.gmra.mxu1 %vm249_vm3, %v37_v30  ;;  %v75_v30 = vld [vmem:[%s1544_s3 + $0x88] sm:$0xff] }
  0x26   :  { %546 = vperm.xlu2 %997, %v436_v31   ;;  %v50_v31 = vld [vmem:[%s1543_s2 + $0x88] sm:$0xff] }
  0x29   :  { %975 = vmatmul.msk.f32.gmra.mxu2 %vm249_vm3, %v55_v40  ;;  %v51_v40 = vld [vmem:[%s1543_s2 + $0x90] sm:$0xff] }
  0x2a   :  { %456 = vperm.xlu0 %995, %v418_v35  }
  0x2b   :  { %541 = vperm.xlu1 %996, %v435_v34  }
  0x2c   :  { %933 = vmatmul.msk.f32.gmra.mxu0 %vm83_vm2, %v63_v36 }
  0x2d   :  { %958 = vmatmul.msk.f32.gmra.mxu1 %vm249_vm3, %v38_v37 }
  0x2e   :  { %451 = vperm.xlu2 %997, %v417_v38  }
  0x31   :  { %976 = vmatmul.msk.f32.gmra.mxu2 %vm249_vm3, %v56_v46 }
  0x32   :  { %536 = vperm.xlu0 %995, %v434_v41  }
  0x33   :  { %446 = vperm.xlu1 %996, %v416_v42  }
  0x34   :  { %934 = vmatmul.msk.f32.gmra.mxu0 %vm83_vm2, %v64_v43 }
  0x35   :  { %959 = vmatmul.msk.f32.gmra.mxu1 %vm249_vm3, %v39_v44 }
  0x36   :  { %531 = vperm.xlu2 %997, %v433_v51  }
  0x3a   :  { %441 = vperm.xlu0 %995, %v415_v47  }
  0x3b   :  { %526 = vperm.xlu1 %996, %v432_v48  }
  0x3c   :  { %935 = vmatmul.msk.f32.gmra.mxu0 %vm83_vm2, %v65_v49 }
  0x3d   :  { %960 = vmatmul.msk.f32.gmra.mxu1 %vm249_vm3, %v40_v50 }
  0x3e   :  { %521 = vperm.xlu2 %997, %v431_v56  }
  0x42   :  { %700 = vperm.xlu0 %995, %v642_v52  }
  0x43   :  { %695 = vperm.xlu1 %996, %v641_v53  }
  0x44   :  { %936 = vmatmul.msk.f32.gmra.mxu0 %vm83_vm2, %v66_v54 }
  0x45   :  { %961 = vmatmul.msk.f32.gmra.mxu1 %vm249_vm3, %v41_v55 }
  0x46   :  { %690 = vperm.xlu2 %997, %v640_v61  }
  0x4a   :  { %685 = vperm.xlu0 %995, %v639_v57  }
  0x4b   :  { %680 = vperm.xlu1 %996, %v638_v58  }
  0x4c   :  { %937 = vmatmul.msk.f32.gmra.mxu0 %vm83_vm2, %v67_v59 }
  0x4d   :  { %962 = vmatmul.msk.f32.gmra.mxu1 %vm249_vm3, %v42_v60 }
  0x4e   :  { %675 = vperm.xlu2 %997, %v637_v2  }
  0x52   :  { %670 = vperm.xlu0 %995, %v636_v62  }
  0x53   :  { %665 = vperm.xlu1 %996, %v635_v63  }
  0x54   :  { %938 = vmatmul.msk.f32.gmra.mxu0 %vm83_vm2, %v68_v0 }
  0x55   :  { %963 = vmatmul.msk.f32.gmra.mxu1 %vm249_vm3, %v43_v1 }
  0x56   :  { %660 = vperm.xlu2 %997, %v634_v7  }
  0x5a   :  { %655 = vperm.xlu0 %995, %v633_v3  }
  0x5b   :  { %650 = vperm.xlu1 %996, %v632_v4  }
  0x5c   :  { %939 = vmatmul.msk.f32.gmra.mxu0 %vm83_vm2, %v69_v5 }
  0x5d   :  { %964 = vmatmul.msk.f32.gmra.mxu1 %vm249_vm3, %v44_v6 }
  0x5e   :  { %645 = vperm.xlu2 %997, %v631_v11  }
  0x60   :  { %v1398_v33 = vpop.permute.xlu2 %496 }
  0x62   :  { %862 = vperm.xlu0 %995, %v859_v8  }
  0x64   :  { %940 = vmatmul.msk.f32.gmra.mxu0 %vm83_vm2, %v70_v9 }
  0x65   :  { %965 = vmatmul.msk.f32.gmra.mxu1 %vm249_vm3, %v45_v10 }
  0x68   :  { %v1414_v42 = vpop.permute.xlu2 %491 }
  0x6c   :  { %941 = vmatmul.msk.f32.gmra.mxu0 %vm83_vm2, %v71_v12 }
  0x6d   :  { %966 = vmatmul.msk.f32.gmra.mxu1 %vm249_vm3, %v46_v13 }
  0x70   :  { %v1418_v51 = vpop.permute.xlu2 %476 }
  0x74   :  { %942 = vmatmul.msk.f32.gmra.mxu0 %vm83_vm2, %v72_v14  ;;  %v1362_v16 = vpop.permute.xlu0 %516 }
  0x75   :  { %967 = vmatmul.msk.f32.gmra.mxu1 %vm249_vm3, %v47_v15  ;;  %v1370_v19 = vpop.permute.xlu1 %506 }
  0x78   :  { %v467_v0 = vpop.permute.xlu2 %466 }
  0x7c   :  { %943 = vmatmul.msk.f32.gmra.mxu0 %vm83_vm2, %v73_v17  ;;  %v1374_v20 = vpop.permute.xlu0 %511 }
  0x7d   :  { %968 = vmatmul.msk.f32.gmra.mxu1 %vm249_vm3, %v48_v18  ;;  %v1384_v26 = vpop.permute.xlu1 %501 }
  0x81   :  { %v177_v21 = vpop.f32.mrf.mxu0 }
  0x82   :  { %v343_v22 = vpop.f32.mrf.mxu1 }
  0x83   :  { %v1382_v25 = vadd.f32 %v343_v22, %v177_v21  ;;  %v547_v22 = vpop.permute.xlu2 %546 }
  0x84   :  { %944 = vmatmul.msk.f32.gmra.mxu0 %vm83_vm2, %v74_v23  ;;  %v1388_v27 = vpop.permute.xlu0 %486 }
  0x85   :  { %969 = vmatmul.msk.f32.gmra.mxu1 %vm249_vm3, %v49_v24  ;;  %v1402_v35 = vpop.permute.xlu1 %481 }
  0x89   :  { %v180_v28 = vpop.f32.mrf.mxu0 }
  0x8a   :  { %v346_v29 = vpop.f32.mrf.mxu1 }
  0x8b   :  { %v1396_v32 = vadd.f32 %v346_v29, %v180_v28 }
  0x8c   :  { %945 = vmatmul.msk.f32.gmra.mxu0 %vm83_vm2, %v75_v30  ;;  %v472_v34 = vpop.permute.xlu0 %471  ;;  %v234_v36 = vpop.f32.mrf.mxu2 }
  0x8d   :  { %970 = vmatmul.msk.f32.gmra.mxu1 %vm249_vm3, %v50_v31  ;;  %v557_v44 = vpop.permute.xlu1 %556 }
  0x8f   :  { %v237_v52 = vpop.f32.mrf.mxu3 }
  0x91   :  { %v183_v37 = vpop.f32.mrf.mxu0 }
  0x92   :  { %v349_v38 = vpop.f32.mrf.mxu1 }
  0x93   :  { %v1410_v41 = vadd.f32 %v349_v38, %v183_v37 }
  0x94   :  { %946 = vmatmul.msk.f32.gmra.mxu0 %vm83_vm2, %v76_v39  ;;  %v552_v43 = vpop.permute.xlu0 %551  ;;  %v400_v45 = vpop.f32.mrf.mxu2 }
  0x95   :  { %971 = vmatmul.msk.f32.gmra.mxu1 %vm249_vm3, %v51_v40  ;;  %v462_v57 = vpop.permute.xlu1 %461  ;;  %v401_v24 = vadd.f32 %v400_v45, %v234_v36 }
  0x97   :  { %v240_v59 = vpop.f32.mrf.mxu3 }
  0x99   :  { %v186_v46 = vpop.f32.mrf.mxu0 }
  0x9a   :  { %v352_v47 = vpop.f32.mrf.mxu1 }
  0x9b   :  { %v353_v48 = vadd.f32 %v352_v47, %v186_v46 }
  0x9c   :  { %v457_v49 = vpop.permute.xlu0 %456  ;;  %v403_v53 = vpop.f32.mrf.mxu2 }
  0x9d   :  { %v1416_v50 = vadd.f32 %v457_v49, %v353_v48  ;;  %v404_v18 = vadd.f32 %v403_v53, %v237_v52  ;;  %v542_v30 = vpop.permute.xlu1 %541 }
  0x9f   :  { %v243_v2 = vpop.f32.mrf.mxu3  ;;  %v579_v37 = vadd.f32 %v542_v30, %v404_v18 }
  0xa1   :  { %v189_v54 = vpop.f32.mrf.mxu0  ;;  %v603_v46 = vmax.f32 %v579_v37, 0.0 }
  0xa2   :  { %v355_v55 = vpop.f32.mrf.mxu1 }
  0xa3   :  { %v356_v56 = vadd.f32 %v355_v55, %v189_v54 }
  0xa4   :  { %v406_v60 = vpop.f32.mrf.mxu2  ;;  %v537_v31 = vpop.permute.xlu0 %536 }
  0xa5   :  { %v1420_v58 = vadd.f32 %v462_v57, %v356_v56  ;;  %v407_v15 = vadd.f32 %v406_v60, %v240_v59  ;;  %v578_v47 = vadd.f32 %v537_v31, %v401_v24 }
  0xa7   :  { %v246_v9 = vpop.f32.mrf.mxu3  ;;  %v580_v29 = vadd.f32 %v547_v22, %v407_v15 }
  0xa9   :  { %v192_v61 = vpop.f32.mrf.mxu0 }
  0xaa   :  { %v358_v62 = vpop.f32.mrf.mxu1 }
  0xab   :  { %v359_v63 = vadd.f32 %v358_v62, %v192_v61 }
  0xac   :  { %v409_v3 = vpop.f32.mrf.mxu2 }
  0xad   :  { %v1422_v1 = vadd.f32 %v467_v0, %v359_v63  ;;  %v410_v8 = vadd.f32 %v409_v3, %v243_v2 }
  0xaf   :  { %v581_v21 = vadd.f32 %v552_v43, %v410_v8  ;;  %v602_v43 = vmax.f32 %v578_v47, 0.0  ;;  %v587_v47 = vmax.f32 %v1420_v58, 0.0 }
  0xb1   :  { %v195_v4 = vpop.f32.mrf.mxu0  ;;  %v605_v28 = vmax.f32 %v581_v21, 0.0  ;;  %v452_v21 = vpop.permute.xlu2 %451 }
  0xb2   :  { %v361_v5 = vpop.f32.mrf.mxu1 }
  0xb3   :  { %v362_v6 = vadd.f32 %v361_v5, %v195_v4 }
  0xb4   :  { %v412_v10 = vpop.f32.mrf.mxu2 }
  0xb5   :  { %v1424_v7 = vadd.f32 %v472_v34, %v362_v6  ;;  %v413_v13 = vadd.f32 %v412_v10, %v246_v9  ;;  %v604_v34 = vmax.f32 %v580_v29, 0.0 }
  0xb7   :  { %v582_v17 = vadd.f32 %v557_v44, %v413_v13 }
  0xb9   :  { %v198_v11 = vpop.f32.mrf.mxu0  ;;  %v606_v23 = vmax.f32 %v582_v17, 0.0  ;;  %v532_v30 = vpop.permute.xlu2 %531 }
  0xba   :  { %v364_v12 = vpop.f32.mrf.mxu1 }
  0xbb   :  { %v1426_v14 = vadd.f32 %v364_v12, %v198_v11  ;;  %801 = vmatpush.msrb.mxu3 %v606_v23 }
  0xbd   :  { %802 = vmatpush.msrb.mxu3 %v605_v28  ;;  %v566_v28 = vadd.f32 %v1418_v51, %v1426_v14  ;;  %v561_v14 = vadd.f32 %v452_v21, %v1410_v41 }
  0xbf   :  { %803 = vmatpush.msrb.mxu3 %v604_v34  ;;  %v589_v34 = vmax.f32 %v1424_v7, 0.0  ;;  %v586_v7 = vmax.f32 %v1416_v50, 0.0 }
  0xc1   :  { %v201_v38 = vpop.f32.mrf.mxu0  ;;  %804 = vmatpush.msrb.mxu3 %v603_v46 }
  0xc2   :  { %v367_v39 = vpop.f32.mrf.mxu1 }
  0xc3   :  { %v368_v40 = vadd.f32 %v367_v39, %v201_v38  ;;  %805 = vmatpush.msrb.mxu3 %v602_v43  ;;  %v588_v39 = vmax.f32 %v1422_v1, 0.0 }
  0xc5   :  { %v567_v44 = vadd.f32 %v1402_v35, %v368_v40 }
  0xc7   :  { %v591_v31 = vmax.f32 %v567_v44, 0.0 }
  0xc9   :  { %v204_v36 = vpop.f32.mrf.mxu0 }
  0xca   :  { %v370_v45 = vpop.f32.mrf.mxu1 }
  0xcb   :  { %v371_v15 = vadd.f32 %v370_v45, %v204_v36  ;;  %v442_v36 = vpop.permute.xlu0 %441  ;;  %v522_v45 = vpop.permute.xlu2 %521 }
  0xd1   :  { %v207_v48 = vpop.f32.mrf.mxu0 }
  0xd2   :  { %v373_v49 = vpop.f32.mrf.mxu1 }
  0xd3   :  { %v374_v9 = vadd.f32 %v373_v49, %v207_v48 }
  0xd9   :  { %v210_v52 = vpop.f32.mrf.mxu0 }
  0xda   :  { %v376_v53 = vpop.f32.mrf.mxu1 }
  0xdb   :  { %v377_v5 = vadd.f32 %v376_v53, %v210_v52  ;;  %v585_v52 = vmax.f32 %v561_v14, 0.0  ;;  %v559_v53 = vadd.f32 %v442_v36, %v1382_v25  ;;  %v610_v25 = vld [vmem:[%s1546_s5 + $0x18] sm:$0xff] }
  0xdd   :  { %v570_v17 = vadd.f32 %v1398_v33, %v377_v5  ;;  %v447_v33 = vpop.permute.xlu1 %446  ;;  %v583_v50 = vmax.f32 %v559_v53, 0.0  ;;  %v621_v5 = vld [vmem:[%s1546_s5 + $0x70] sm:$0xff] }
  0xde   :  { %v560_v48 = vadd.f32 %v447_v33, %v1396_v32  ;;  %v607_v32 = vld [vmem:[%s1546_s5] sm:$0xff] }
  0xdf   :  { %v594_v22 = vmax.f32 %v570_v17, 0.0  ;;  %v691_v17 = vpop.permute.xlu2 %690 }
  0xe1   :  { %v213_v54 = vpop.f32.mrf.mxu0 }
  0xe2   :  { %v379_v55 = vpop.f32.mrf.mxu1 }
  0xe3   :  { %v380_v2 = vadd.f32 %v379_v55, %v213_v54  ;;  %v584_v54 = vmax.f32 %v560_v48, 0.0  ;;  %v608_v55 = vld [vmem:[%s1546_s5 + $0x8] sm:$0xff] }
  0xe5   :  { %v571_v10 = vadd.f32 %v1384_v26, %v380_v2  ;;  %v527_v51 = vpop.permute.xlu1 %526  ;;  %v620_v2 = vld [vmem:[%s1546_s5 + $0x68] sm:$0xff] }
  0xe7   :  { %v676_v21 = vpop.permute.xlu2 %675 }
  0xe9   :  { %v216_v56 = vpop.f32.mrf.mxu0 }
  0xea   :  { %v382_v57 = vpop.f32.mrf.mxu1 }
  0xeb   :  { %v383_v0 = vadd.f32 %v382_v57, %v216_v56  ;;  %v609_v56 = vld [vmem:[%s1546_s5 + $0x10] sm:$0xff]  ;;  %v612_v57 = vld [vmem:[%s1546_s5 + $0x28] sm:$0xff] }
  0xed   :  { %v572_v6 = vadd.f32 %v1370_v19, %v383_v0  ;;  %v568_v19 = vadd.f32 %v1388_v27, %v371_v15  ;;  %v618_v0 = vld [vmem:[%s1546_s5 + $0x58] sm:$0xff]  ;;  %v629_v15 = vld [vmem:[%s1546_s5 + $0xb0] sm:$0xff] }
  0xef   :  { %v596_v18 = vmax.f32 %v572_v6, 0.0  ;;  %v592_v29 = vmax.f32 %v568_v19, 0.0  ;;  %v624_v6 = vld [vmem:[%s1546_s5 + $0x88] sm:$0xff]  ;;  %v661_v19 = vpop.permute.xlu2 %660 }
  0xf1   :  { %v219_v59 = vpop.f32.mrf.mxu0 }
  0xf2   :  { %v385_v60 = vpop.f32.mrf.mxu1 }
  0xf3   :  { %v386_v61 = vadd.f32 %v385_v60, %v219_v59  ;;  %v611_v59 = vld [vmem:[%s1546_s5 + $0x20] sm:$0xff]  ;;  %v614_v60 = vld [vmem:[%s1546_s5 + $0x38] sm:$0xff] }
  0xf5   :  { %v573_v3 = vadd.f32 %v1374_v20, %v386_v61  ;;  %v569_v20 = vadd.f32 %v1414_v42, %v374_v9  ;;  %v590_v42 = vmax.f32 %v566_v28, 0.0  ;;  %v613_v61 = vld [vmem:[%s1546_s5 + $0x30] sm:$0xff]  ;;  %v626_v9 = vld [vmem:[%s1546_s5 + $0x98] sm:$0xff] }
  0xf7   :  { %v597_v11 = vmax.f32 %v573_v3, 0.0  ;;  %v593_v23 = vmax.f32 %v569_v20, 0.0  ;;  %v619_v3 = vld [vmem:[%s1546_s5 + $0x60] sm:$0xff]  ;;  %v701_v20 = vpop.permute.xlu0 %700 }
  0xf9   :  { %v222_v62 = vpop.f32.mrf.mxu0 }
  0xfa   :  { %v388_v63 = vpop.f32.mrf.mxu1 }
  0xfb   :  { %v389_v35 = vadd.f32 %v388_v63, %v222_v62  ;;  %v616_v62 = vld [vmem:[%s1546_s5 + $0x48] sm:$0xff]  ;;  %v615_v63 = vld [vmem:[%s1546_s5 + $0x40] sm:$0xff] }
  0xfd   :  { %v574_v4 = vadd.f32 %v1362_v16, %v389_v35  ;;  %v595_v16 = vmax.f32 %v571_v10, 0.0  ;;  %v617_v35 = vld [vmem:[%s1546_s5 + $0x50] sm:$0xff] }
  0xfe   :  { %v625_v10 = vld [vmem:[%s1546_s5 + $0x90] sm:$0xff] }
  0xff   :  { %v598_v8 = vmax.f32 %v574_v4, 0.0  ;;  %v622_v4 = vld [vmem:[%s1546_s5 + $0x78] sm:$0xff] }
 0x101   :  { %740 = vmatpush.msra.mxu2 %v598_v8  ;;  %v225_v12 = vpop.f32.mrf.mxu0  ;;  %v623_v8 = vld [vmem:[%s1546_s5 + $0x80] sm:$0xff] }
 0x102   :  { %v391_v13 = vpop.f32.mrf.mxu1 }
 0x103   :  { %741 = vmatpush.msra.mxu2 %v597_v11  ;;  %v392_v40 = vadd.f32 %v391_v13, %v225_v12  ;;  %v628_v11 = vld [vmem:[%s1546_s5 + $0xa8] sm:$0xff]  ;;  %v627_v12 = vld [vmem:[%s1546_s5 + $0xa0] sm:$0xff]  ;;  %v630_v13 = vld [vmem:[%s1546_s5 + $0xb8] sm:$0xff] }
 0x105   :  { %742 = vmatpush.msra.mxu2 %v596_v18  ;;  %v575_v1 = vadd.f32 %v522_v45, %v392_v40  ;;  %v696_v18 = vpop.permute.xlu1 %695 }
 0x107   :  { %743 = vmatpush.msra.mxu2 %v595_v16  ;;  %v599_v58 = vmax.f32 %v575_v1, 0.0 }
 0x109   :  { %744 = vmatpush.msra.mxu2 %v594_v22  ;;  %v228_v26 = vpop.f32.mrf.mxu0  ;;  %v686_v22 = vpop.permute.xlu0 %685 }
 0x10a   :  { %v394_v24 = vpop.f32.mrf.mxu1 }
 0x10b   :  { %745 = vmatpush.msra.mxu2 %v593_v23  ;;  %v395_v27 = vadd.f32 %v394_v24, %v228_v26  ;;  %v646_v24 = vpop.permute.xlu2 %645 }
 0x10d   :  { %746 = vmatpush.msra.mxu2 %v592_v29  ;;  %v576_v43 = vadd.f32 %v527_v51, %v395_v27  ;;  %v681_v16 = vpop.permute.xlu1 %680 }
 0x10f   :  { %747 = vmatpush.msra.mxu2 %v591_v31  ;;  %v600_v41 = vmax.f32 %v576_v43, 0.0 }
 0x111   :  { %748 = vmatpush.msra.mxu2 %v590_v42  ;;  %v231_v37 = vpop.f32.mrf.mxu0 }
 0x112   :  { %v397_v38 = vpop.f32.mrf.mxu1 }
 0x113   :  { %v398_v46 = vadd.f32 %v397_v38, %v231_v37  ;;  %749 = vmatpush.msra.mxu2 %v589_v34 }
 0x115   :  { %750 = vmatpush.msra.mxu2 %v588_v39  ;;  %v577_v44 = vadd.f32 %v532_v30, %v398_v46  ;;  %v666_v23 = vpop.permute.xlu1 %665  ;;  %v671_v30 = vpop.permute.xlu0 %670 }
 0x117   :  { %751 = vmatpush.msra.mxu2 %v587_v47  ;;  %v601_v49 = vmax.f32 %v577_v44, 0.0 }
 0x119   :  { %752 = vmatpush.msra.mxu2 %v586_v7  ;;  %806 = vmatpush.msrb.mxu3 %v601_v49 }
 0x11b   :  { %753 = vmatpush.msra.mxu2 %v585_v52  ;;  %807 = vmatpush.msrb.mxu3 %v600_v41 }
 0x11d   :  { %754 = vmatpush.msra.mxu2 %v584_v54  ;;  %808 = vmatpush.msrb.mxu3 %v599_v58  ;;  %v651_v42 = vpop.permute.xlu1 %650  ;;  %v656_v39 = vpop.permute.xlu0 %655 }
 0x11e   :  { %977 = vmatmul.msk.f32.vlgmr.msrb.gmra.mxu3 %vm703_vm4, %v608_v55 }
 0x11f   :  { %755 = vmatpush.msra.mxu2 %v583_v50 }
 0x120   :  { %756 = vmatmul.f32.vlgmr.msra.gmra.mxu2 %v607_v32 }
 0x126   :  { %978 = vmatmul.msk.f32.gmra.mxu3 %vm703_vm4, %v610_v25 }
 0x128   :  { %759 = vmatmul.f32.gmra.mxu2 %v609_v56 }
 0x12e   :  { %979 = vmatmul.msk.f32.gmra.mxu3 %vm703_vm4, %v612_v57 }
 0x130   :  { %762 = vmatmul.f32.gmra.mxu2 %v611_v59 }
 0x136   :  { %980 = vmatmul.msk.f32.gmra.mxu3 %vm703_vm4, %v614_v60 }
 0x138   :  { %765 = vmatmul.f32.gmra.mxu2 %v613_v61 }
 0x13e   :  { %981 = vmatmul.msk.f32.gmra.mxu3 %vm703_vm4, %v616_v62 }
 0x140   :  { %768 = vmatmul.f32.gmra.mxu2 %v615_v63 }
 0x146   :  { %982 = vmatmul.msk.f32.gmra.mxu3 %vm703_vm4, %v618_v0 }
 0x148   :  { %771 = vmatmul.f32.gmra.mxu2 %v617_v35 }
 0x14e   :  { %983 = vmatmul.msk.f32.gmra.mxu3 %vm703_vm4, %v620_v2 }
 0x150   :  { %774 = vmatmul.f32.gmra.mxu2 %v619_v3 }
 0x156   :  { %984 = vmatmul.msk.f32.gmra.mxu3 %vm703_vm4, %v622_v4 }
 0x158   :  { %777 = vmatmul.f32.gmra.mxu2 %v621_v5 }
 0x15e   :  { %985 = vmatmul.msk.f32.gmra.mxu3 %vm703_vm4, %v624_v6 }
 0x160   :  { %780 = vmatmul.f32.gmra.mxu2 %v623_v8 }
 0x166   :  { %986 = vmatmul.msk.f32.gmra.mxu3 %vm703_vm4, %v626_v9 }
 0x168   :  { %783 = vmatmul.f32.gmra.mxu2 %v625_v10 }
 0x16e   :  { %987 = vmatmul.msk.f32.gmra.mxu3 %vm703_vm4, %v628_v11 }
 0x170   :  { %786 = vmatmul.f32.gmra.mxu2 %v627_v12 }
 0x176   :  { %988 = vmatmul.msk.f32.gmra.mxu3 %vm703_vm4, %v630_v13 }
 0x178   :  { %789 = vmatmul.f32.gmra.mxu2 %v629_v15 }
 0x1a1   :  { %v810_v26 = vpop.f32.mrf.mxu3 }
 0x1a3   :  { %v757_v28 = vpop.f32.mrf.mxu2 }
 0x1a4   :  { %v758_v29 = vadd.f32 %v757_v28, %v646_v24  ;;  %v863_v24 = vpop.permute.xlu0 %862 }
 0x1a6   :  { %v1529_v33 = vadd.f32 %v810_v26, %v758_v29  ;;  %v858_v26 = vld [vmem:[%s1548_s7] sm:$0x3]  ;;  %s1029_s7 = smov [#allocation2]  }
 0x1a7   :  { %s916_s11 = sshll.u32 %s1029_s7, 4  ;;  %s917_s11 = int_to_ptr.vmem [resolvable:$true] %s916_s11 }
 0x1a9   :  { %v813_v31 = vpop.f32.mrf.mxu3 }
 0x1ab   :  { %v760_v34 = vpop.f32.mrf.mxu2 }
 0x1ac   :  { %v761_v27 = vadd.f32 %v760_v34, %v651_v42 }
 0x1ae   :  { %v1531_v37 = vadd.f32 %v813_v31, %v761_v27 }
 0x1b1   :  { %v816_v38 = vpop.f32.mrf.mxu3 }
 0x1b3   :  { %v763_v40 = vpop.f32.mrf.mxu2 }
 0x1b4   :  { %v764_v46 = vadd.f32 %v763_v40, %v656_v39 }
 0x1b6   :  { %v817_v51 = vadd.f32 %v816_v38, %v764_v46 }
 0x1b9   :  { %v819_v14 = vpop.f32.mrf.mxu3 }
 0x1bb   :  { %v766_v47 = vpop.f32.mrf.mxu2 }
 0x1bc   :  { %v767_v44 = vadd.f32 %v766_v47, %v661_v19  ;;  %v848_v19 = vmax.f32 %v817_v51, 0.0 }
 0x1be   :  { %v820_v43 = vadd.f32 %v819_v14, %v767_v44 }
 0x1c1   :  { %v822_v36 = vpop.f32.mrf.mxu3 }
 0x1c3   :  { %v769_v45 = vpop.f32.mrf.mxu2 }
 0x1c4   :  { %v770_v7 = vadd.f32 %v769_v45, %v666_v23  ;;  %v846_v23 = vmax.f32 %v1529_v33, 0.0 }
 0x1c6   :  { %v823_v48 = vadd.f32 %v822_v36, %v770_v7 }
 0x1c9   :  { %v825_v49 = vpop.f32.mrf.mxu3 }
 0x1cb   :  { %v772_v1 = vpop.f32.mrf.mxu2 }
 0x1cc   :  { %v773_v9 = vadd.f32 %v772_v1, %v671_v30 }
 0x1ce   :  { %v826_v15 = vadd.f32 %v825_v49, %v773_v9 }
 0x1d1   :  { %v828_v52 = vpop.f32.mrf.mxu3 }
 0x1d3   :  { %v775_v53 = vpop.f32.mrf.mxu2 }
 0x1d4   :  { %v776_v5 = vadd.f32 %v775_v53, %v676_v21  ;;  %v849_v21 = vmax.f32 %v820_v43, 0.0 }
 0x1d6   :  { %v829_v12 = vadd.f32 %v828_v52, %v776_v5 }
 0x1d9   :  { %v831_v41 = vpop.f32.mrf.mxu3 }
 0x1db   :  { %v778_v54 = vpop.f32.mrf.mxu2 }
 0x1dc   :  { %v779_v2 = vadd.f32 %v778_v54, %v681_v16  ;;  %v850_v16 = vmax.f32 %v823_v48, 0.0 }
 0x1de   :  { %v832_v10 = vadd.f32 %v831_v41, %v779_v2 }
 0x1e1   :  { %v834_v58 = vpop.f32.mrf.mxu3 }
 0x1e3   :  { %v781_v55 = vpop.f32.mrf.mxu2 }
 0x1e4   :  { %v782_v63 = vadd.f32 %v781_v55, %v686_v22  ;;  %v847_v22 = vmax.f32 %v1531_v37, 0.0 }
 0x1e6   :  { %v835_v6 = vadd.f32 %v834_v58, %v782_v63 }
 0x1e8   :  { %v854_v13 = vmax.f32 %v835_v6, 0.0 }
 0x1e9   :  { %v837_v50 = vpop.f32.mrf.mxu3 }
 0x1eb   :  { %v784_v32 = vpop.f32.mrf.mxu2 }
 0x1ec   :  { %v785_v61 = vadd.f32 %v784_v32, %v691_v17  ;;  %v853_v17 = vmax.f32 %v832_v10, 0.0 }
 0x1ee   :  { %v838_v3 = vadd.f32 %v837_v50, %v785_v61 }
 0x1f0   :  { %v855_v11 = vmax.f32 %v838_v3, 0.0 }
 0x1f1   :  { %v840_v25 = vpop.f32.mrf.mxu3 }
 0x1f3   :  { %v787_v56 = vpop.f32.mrf.mxu2 }
 0x1f4   :  { %v788_v57 = vadd.f32 %v787_v56, %v696_v18  ;;  %v852_v18 = vmax.f32 %v829_v12, 0.0 }
 0x1f6   :  { %v841_v0 = vadd.f32 %v840_v25, %v788_v57 }
 0x1f8   :  { %v856_v8 = vmax.f32 %v841_v0, 0.0 }
 0x1f9   :  { %v843_v60 = vpop.f32.mrf.mxu3 }
 0x1fb   :  { %v790_v59 = vpop.f32.mrf.mxu2 }
 0x1fc   :  { %v791_v62 = vadd.f32 %v790_v59, %v701_v20  ;;  %v851_v20 = vmax.f32 %v826_v15, 0.0 }
 0x1fe   :  { %v844_v35 = vadd.f32 %v843_v60, %v791_v62 }
 0x200   :  { %v857_v4 = vmax.f32 %v844_v35, 0.0 }
 0x202   :  { %873 = vmatpush.msra.mxu3 %v857_v4 }
 0x204   :  { %874 = vmatpush.msra.mxu3 %v856_v8 }
 0x206   :  { %875 = vmatpush.msra.mxu3 %v855_v11 }
 0x208   :  { %876 = vmatpush.msra.mxu3 %v854_v13 }
 0x20a   :  { %877 = vmatpush.msra.mxu3 %v853_v17 }
 0x20c   :  { %878 = vmatpush.msra.mxu3 %v852_v18 }
 0x20e   :  { %879 = vmatpush.msra.mxu3 %v851_v20 }
 0x210   :  { %880 = vmatpush.msra.mxu3 %v850_v16 }
 0x212   :  { %881 = vmatpush.msra.mxu3 %v849_v21 }
 0x214   :  { %882 = vmatpush.msra.mxu3 %v848_v19 }
 0x216   :  { %883 = vmatpush.msra.mxu3 %v847_v22 }
 0x218   :  { %884 = vmatpush.msra.mxu3 %v846_v23 }
 0x219   :  { %989 = vmatmul.msk.f32.vlgmr.msra.gmra.mxu3 %vm865_vm5, %v858_v26 }
 0x29c   :  { %v886_v28 = vpop.f32.mrf.mxu3 }
 0x29d   :  { %v887_v29 = vadd.f32 %v886_v28, %v863_v24 }
 0x29f   :  { %v890_v30 = vmin.f32 %v887_v29, 20.0  ;;  %vm889_vm8 = vcmp.gt.f32.partialorder %v887_v29, 20.0 }
 0x2a1   :  { %v891_v31 = vmul.f32 1.442695, %v890_v30 }
 0x2a3   :  { %998 = vpow2.f32 %v891_v31 }
 0x2a9   :  { %v999_v42 = vpop.eup %998 }
 0x2aa   :  { %v893_v34 = vadd.f32 1.0, %v999_v42  ;;  %v896_v27 = vmul.f32 -0.5, %v999_v42  ;;  %v899_v33 = vand.u32 2147483647, %v999_v42 }
 0x2ac   :  { %1000 = vlog2.f32 %v893_v34  ;;  %v897_v37 = vadd.f32 1.0, %v896_v27  ;;  %vm900_vm6 = vcmp.lt.f32.partialorder %v899_v33, 0.0004427343 }
 0x2ae   :  { %v898_v40 = vmul.f32 %v999_v42, %v897_v37 }
 0x2b2   :  { %v1001_v38 = vpop.eup %1000 }
 0x2b3   :  { %v895_v39 = vmul.f32 0.6931472, %v1001_v38 }
 0x2b5   :  { %v901_v46 = vsel %vm900_vm6, %v898_v40, %v895_v39 }
 0x2b6   :  { %v902_v51 = vsel %vm889_vm8, %v887_v29, %v901_v46 }
 0x2b7   :  { %v906_v14 = vrot.slane %v902_v51, 1  ;;  %904 = vst.msk [vmem:[#allocation2] sm:$0x3] %vm903_vm7, %v902_v51 }
 0x2b9   :  { %v908_v47 = vadd.f32 %v906_v14, %v902_v51 }
 0x2bb   :  { %910 = vst.msk [vmem:[#allocation2 + $0x2] sm:$0x1] %vm909_vm9, %v908_v47 }
 0x2bc   :  { %921 = dma.vmem_to_hbm [thread:$0]  %s917_s11, 64, %s919_s4, [#allocation3]  }
 0x2bd   :  { %1026 = dma.done.wait [#allocation3], 64  }
 0x2be   :  { %1027 = vsyncadd [#allocation3], 4294967232 }
 0x2bf   :  { %926 = vsyncpa [#allocation3], 1 }

// kernel: tpu_custom_call.1
= control target key start
LH: loop header
LB: loop body
LE: loop exit
PB: predicated region body
PF: predicated region fallthrough
CT: control target
= control target key end

     0   :  { %vm156_vm0 = vcmask 1043456   ;;  %v1028_v2 = vmov 0   ;;  %vm322_vm1 = vcmask 1045504   ;;  %vm83_vm2 = vcmask 31744   ;;  %s1541_s0 = inlined_call_operand.vmem [shape: f32[6,8], index: 0, kind: input, shape index: {}]   ;;  %s1542_s1 = inlined_call_operand.vmem [shape: f32[4,8], index: 1, kind: input, shape index: {}]   ;;  %s1543_s2 = inlined_call_operand.vmem [shape: f32[192,6], index: 2, kind: input, shape index: {}]   ;;  %s1544_s3 = inlined_call_operand.vmem [shape: f32[192,4], index: 3, kind: input, shape index: {}]   ;;  %s1545_s4 = inlined_call_operand.vmem [shape: f32[192,1], index: 4, kind: input, shape index: {}]   ;;  %s1546_s5 = inlined_call_operand.vmem [shape: f32[96,192], index: 5, kind: input, shape index: {}]   ;;  %s1547_s6 = inlined_call_operand.vmem [shape: f32[96,1], index: 6, kind: input, shape index: {}]   ;;  %s1548_s7 = inlined_call_operand.vmem [shape: f32[2,96], index: 7, kind: input, shape index: {}]   ;;  %s1549_s8 = inlined_call_operand.vmem [shape: f32[2,1], index: 8, kind: input, shape index: {}]   ;;  %s1550_s9 = inlined_call_operand.hbm [shape: f32[3,8], index: 9, kind: output, shape index: {}]  }
   0x1   :  { %v82_v0 = vld [vmem:[%s1542_s1] sm:$0xf]  ;;  %996 = vset.pattern.permute.xlu1 %v1028_v2  ;;  %995 = vset.pattern.permute.xlu0 %v1028_v2  ;;  %v430_v3 = vld [vmem:[%s1545_s4 + $0x78] sm:$0xff]  ;;  %v428_v4 = vld [vmem:[%s1545_s4 + $0x68] sm:$0xff]  ;;  %vm249_vm3 = vcmask 48128  }
   0x2   :  { %v57_v1 = vld [vmem:[%s1541_s0] sm:$0x3f]  ;;  %927 = vmatpush.msk.msra.mxu0 %vm156_vm0, %v82_v0  ;;  %516 = vperm.xlu0 %995, %v430_v3   ;;  %v426_v7 = vld [vmem:[%s1545_s4 + $0x58] sm:$0xff]  ;;  %v429_v8 = vld [vmem:[%s1545_s4 + $0x70] sm:$0xff] }
   0x3   :  { %v58_v5 = vld [vmem:[%s1544_s3] sm:$0xff]  ;;  %952 = vmatpush.msk.msra.mxu1 %vm322_vm1, %v57_v1  ;;  %506 = vperm.xlu1 %996, %v428_v4   ;;  %v59_v10 = vld [vmem:[%s1544_s3 + $0x8] sm:$0xff] }
   0x4   :  { %v33_v6 = vld [vmem:[%s1543_s2] sm:$0xff]  ;;  %928 = vmatmul.msk.f32.vlgmr.msra.gmra.mxu0 %vm83_vm2, %v58_v5  ;;  %997 = vset.pattern.permute.xlu2 %v1028_v2  ;;  %v34_v11 = vld [vmem:[%s1543_s2 + $0x8] sm:$0xff] }
   0x5   :  { %953 = vmatmul.msk.f32.vlgmr.msra.gmra.mxu1 %vm249_vm3, %v33_v6  ;;  %990 = vmatpush.msk.msra.mxu2 %vm156_vm0, %v82_v0  ;;  %v427_v9 = vld [vmem:[%s1545_s4 + $0x60] sm:$0xff] }
   0x6   :  { %496 = vperm.xlu2 %997, %v426_v7   ;;  %991 = vmatpush.msk.msra.mxu3 %vm156_vm0, %v82_v0 }
   0x7   :  { %992 = vmatpush.msk.msrb.mxu2 %vm322_vm1, %v57_v1 }
   0x8   :  { %14 = vsyncpa [#allocation3], 0  ;;  %v425_v12 = vld [vmem:[%s1545_s4 + $0x50] sm:$0xff]  ;;  %v77_v13 = vld [vmem:[%s1544_s3 + $0x98] sm:$0xff]  ;;  %vm703_vm4 = vcmask 523264   ;;  %vm865_vm5 = vcmask 785408  }
   0x9   :  { %947 = vmatmul.msk.f32.vlgmr.msra.gmra.mxu2 %vm83_vm2, %v77_v13  ;;  %v424_v14 = vld [vmem:[%s1545_s4 + $0x48] sm:$0xff]  ;;  %v423_v15 = vld [vmem:[%s1545_s4 + $0x40] sm:$0xff]  ;;  %v60_v16 = vld [vmem:[%s1544_s3 + $0x10] sm:$0xff]  ;;  %vm903_vm7 = vcmask 58368   ;;  %vm909_vm9 = vcmask 57344  }
   0xa   :  { %511 = vperm.xlu0 %995, %v429_v8   ;;  %v35_v17 = vld [vmem:[%s1543_s2 + $0x10] sm:$0xff]  ;;  %v422_v18 = vld [vmem:[%s1545_s4 + $0x38] sm:$0xff]  ;;  %v420_v24 = vld [vmem:[%s1545_s4 + $0x28] sm:$0xff] }
   0xb   :  { %501 = vperm.xlu1 %996, %v427_v9   ;;  %v52_v19 = vld [vmem:[%s1543_s2 + $0x98] sm:$0xff]  ;;  %v421_v21 = vld [vmem:[%s1545_s4 + $0x30] sm:$0xff]  ;;  %v78_v25 = vld [vmem:[%s1544_s3 + $0xa0] sm:$0xff] }
   0xc   :  { %929 = vmatmul.msk.f32.gmra.mxu0 %vm83_vm2, %v59_v10  ;;  %v438_v20 = vld [vmem:[%s1545_s4 + $0xb8] sm:$0xff]  ;;  %v53_v26 = vld [vmem:[%s1543_s2 + $0xa0] sm:$0xff]  ;;  %948 = vmatmul.msk.f32.vlgmr.msra.gmra.mxu3 %vm83_vm2, %v78_v25  ;;  %v437_v27 = vld [vmem:[%s1545_s4 + $0xb0] sm:$0xff] }
   0xd   :  { %954 = vmatmul.msk.f32.gmra.mxu1 %vm249_vm3, %v34_v11  ;;  %v61_v22 = vld [vmem:[%s1544_s3 + $0x18] sm:$0xff]  ;;  %v419_v28 = vld [vmem:[%s1545_s4 + $0x20] sm:$0xff]  ;;  %v436_v31 = vld [vmem:[%s1545_s4 + $0xa8] sm:$0xff] }
   0xe   :  { %491 = vperm.xlu2 %997, %v425_v12   ;;  %v36_v23 = vld [vmem:[%s1543_s2 + $0x18] sm:$0xff]  ;;  %v62_v29 = vld [vmem:[%s1544_s3 + $0x20] sm:$0xff]  ;;  %v79_v32 = vld [vmem:[%s1544_s3 + $0xa8] sm:$0xff] }
   0xf   :  { %v37_v30 = vld [vmem:[%s1543_s2 + $0x20] sm:$0xff]  ;;  %v54_v33 = vld [vmem:[%s1543_s2 + $0xa8] sm:$0xff]  ;;  %v418_v35 = vld [vmem:[%s1545_s4 + $0x18] sm:$0xff] }
  0x10   :  { %v435_v34 = vld [vmem:[%s1545_s4 + $0xa0] sm:$0xff]  ;;  %v63_v36 = vld [vmem:[%s1544_s3 + $0x28] sm:$0xff]  ;;  %v417_v38 = vld [vmem:[%s1545_s4 + $0x10] sm:$0xff] }
  0x11   :  { %972 = vmatmul.msk.f32.vlgmr.msrb.gmra.mxu2 %vm249_vm3, %v52_v19  ;;  %v38_v37 = vld [vmem:[%s1543_s2 + $0x28] sm:$0xff]  ;;  %v80_v39 = vld [vmem:[%s1544_s3 + $0xb0] sm:$0xff]  ;;  %v434_v41 = vld [vmem:[%s1545_s4 + $0x98] sm:$0xff] }
  0x12   :  { %486 = vperm.xlu0 %995, %v424_v14   ;;  %v55_v40 = vld [vmem:[%s1543_s2 + $0xb0] sm:$0xff]  ;;  %v416_v42 = vld [vmem:[%s1545_s4 + $0x8] sm:$0xff]  ;;  %v81_v45 = vld [vmem:[%s1544_s3 + $0xb8] sm:$0xff] }
  0x13   :  { %481 = vperm.xlu1 %996, %v423_v15   ;;  %v64_v43 = vld [vmem:[%s1544_s3 + $0x30] sm:$0xff]  ;;  %v56_v46 = vld [vmem:[%s1543_s2 + $0xb8] sm:$0xff]  ;;  %v415_v47 = vld [vmem:[%s1545_s4] sm:$0xff] }
  0x14   :  { %930 = vmatmul.msk.f32.gmra.mxu0 %vm83_vm2, %v60_v16  ;;  %949 = vmatmul.msk.f32.gmra.mxu3 %vm83_vm2, %v79_v32  ;;  %v39_v44 = vld [vmem:[%s1543_s2 + $0x30] sm:$0xff]  ;;  %v432_v48 = vld [vmem:[%s1545_s4 + $0x88] sm:$0xff]  ;;  %v65_v49 = vld [vmem:[%s1544_s3 + $0x38] sm:$0xff] }
  0x15   :  { %955 = vmatmul.msk.f32.gmra.mxu1 %vm249_vm3, %v35_v17  ;;  %v40_v50 = vld [vmem:[%s1543_s2 + $0x38] sm:$0xff]  ;;  %v433_v51 = vld [vmem:[%s1545_s4 + $0x90] sm:$0xff]  ;;  %v66_v54 = vld [vmem:[%s1544_s3 + $0x40] sm:$0xff] }
  0x16   :  { %476 = vperm.xlu2 %997, %v422_v18   ;;  %v642_v52 = vld [vmem:[%s1547_s6 + $0x58] sm:$0xff]  ;;  %v641_v53 = vld [vmem:[%s1547_s6 + $0x50] sm:$0xff]  ;;  %v41_v55 = vld [vmem:[%s1543_s2 + $0x40] sm:$0xff] }
  0x17   :  { %v431_v56 = vld [vmem:[%s1545_s4 + $0x80] sm:$0xff]  ;;  %v638_v58 = vld [vmem:[%s1547_s6 + $0x38] sm:$0xff]  ;;  %v67_v59 = vld [vmem:[%s1544_s3 + $0x48] sm:$0xff]  ;;  %s918_s4 = sshll.u32 %s1550_s9, 4  ;;  %s919_s4 = int_to_ptr.hbm [resolvable:$true] %s918_s4 }
  0x18   :  { %v639_v57 = vld [vmem:[%s1547_s6 + $0x40] sm:$0xff]  ;;  %v42_v60 = vld [vmem:[%s1543_s2 + $0x48] sm:$0xff]  ;;  %v68_v0 = vld [vmem:[%s1544_s3 + $0x50] sm:$0xff] }
  0x19   :  { %973 = vmatmul.msk.f32.gmra.mxu2 %vm249_vm3, %v53_v26  ;;  %v640_v61 = vld [vmem:[%s1547_s6 + $0x48] sm:$0xff]  ;;  %v635_v63 = vld [vmem:[%s1547_s6 + $0x20] sm:$0xff]  ;;  %v43_v1 = vld [vmem:[%s1543_s2 + $0x50] sm:$0xff] }
  0x1a   :  { %471 = vperm.xlu0 %995, %v421_v21   ;;  %v636_v62 = vld [vmem:[%s1547_s6 + $0x28] sm:$0xff]  ;;  %v637_v2 = vld [vmem:[%s1547_s6 + $0x30] sm:$0xff]  ;;  %v69_v5 = vld [vmem:[%s1544_s3 + $0x58] sm:$0xff] }
  0x1b   :  { %556 = vperm.xlu1 %996, %v438_v20   ;;  %v633_v3 = vld [vmem:[%s1547_s6 + $0x10] sm:$0xff]  ;;  %v632_v4 = vld [vmem:[%s1547_s6 + $0x8] sm:$0xff]  ;;  %v44_v6 = vld [vmem:[%s1543_s2 + $0x58] sm:$0xff] }
  0x1c   :  { %931 = vmatmul.msk.f32.gmra.mxu0 %vm83_vm2, %v61_v22  ;;  %950 = vmatmul.msk.f32.gmra.mxu3 %vm83_vm2, %v80_v39  ;;  %v634_v7 = vld [vmem:[%s1547_s6 + $0x18] sm:$0xff]  ;;  %v859_v8 = vld [vmem:[%s1549_s8] sm:$0x3]  ;;  %v71_v12 = vld [vmem:[%s1544_s3 + $0x68] sm:$0xff] }
  0x1d   :  { %956 = vmatmul.msk.f32.gmra.mxu1 %vm249_vm3, %v36_v23  ;;  %v70_v9 = vld [vmem:[%s1544_s3 + $0x60] sm:$0xff]  ;;  %v46_v13 = vld [vmem:[%s1543_s2 + $0x68] sm:$0xff]  ;;  %v72_v14 = vld [vmem:[%s1544_s3 + $0x70] sm:$0xff] }
  0x1e   :  { %466 = vperm.xlu2 %997, %v420_v24   ;;  %v45_v10 = vld [vmem:[%s1543_s2 + $0x60] sm:$0xff]  ;;  %v47_v15 = vld [vmem:[%s1543_s2 + $0x70] sm:$0xff]  ;;  %v73_v17 = vld [vmem:[%s1544_s3 + $0x78] sm:$0xff] }
  0x1f   :  { %v631_v11 = vld [vmem:[%s1547_s6] sm:$0xff]  ;;  %v48_v18 = vld [vmem:[%s1543_s2 + $0x78] sm:$0xff]  ;;  %v76_v39 = vld [vmem:[%s1544_s3 + $0x90] sm:$0xff] }
  0x20   :  { %v74_v23 = vld [vmem:[%s1544_s3 + $0x80] sm:$0xff] }
  0x21   :  { %974 = vmatmul.msk.f32.gmra.mxu2 %vm249_vm3, %v54_v33  ;;  %v49_v24 = vld [vmem:[%s1543_s2 + $0x80] sm:$0xff] }
  0x22   :  { %551 = vperm.xlu0 %995, %v437_v27  }
  0x23   :  { %461 = vperm.xlu1 %996, %v419_v28  }
  0x24   :  { %932 = vmatmul.msk.f32.gmra.mxu0 %vm83_vm2, %v62_v29  ;;  %951 = vmatmul.msk.f32.gmra.mxu3 %vm83_vm2, %v81_v45 }
  0x25   :  { %957 = vmatmul.msk.f32.gmra.mxu1 %vm249_vm3, %v37_v30  ;;  %v75_v30 = vld [vmem:[%s1544_s3 + $0x88] sm:$0xff] }
  0x26   :  { %546 = vperm.xlu2 %997, %v436_v31   ;;  %v50_v31 = vld [vmem:[%s1543_s2 + $0x88] sm:$0xff] }
  0x29   :  { %975 = vmatmul.msk.f32.gmra.mxu2 %vm249_vm3, %v55_v40  ;;  %v51_v40 = vld [vmem:[%s1543_s2 + $0x90] sm:$0xff] }
  0x2a   :  { %456 = vperm.xlu0 %995, %v418_v35  }
  0x2b   :  { %541 = vperm.xlu1 %996, %v435_v34  }
  0x2c   :  { %933 = vmatmul.msk.f32.gmra.mxu0 %vm83_vm2, %v63_v36 }
  0x2d   :  { %958 = vmatmul.msk.f32.gmra.mxu1 %vm249_vm3, %v38_v37 }
  0x2e   :  { %451 = vperm.xlu2 %997, %v417_v38  }
  0x31   :  { %976 = vmatmul.msk.f32.gmra.mxu2 %vm249_vm3, %v56_v46 }
  0x32   :  { %536 = vperm.xlu0 %995, %v434_v41  }
  0x33   :  { %446 = vperm.xlu1 %996, %v416_v42  }
  0x34   :  { %934 = vmatmul.msk.f32.gmra.mxu0 %vm83_vm2, %v64_v43 }
  0x35   :  { %959 = vmatmul.msk.f32.gmra.mxu1 %vm249_vm3, %v39_v44 }
  0x36   :  { %531 = vperm.xlu2 %997, %v433_v51  }
  0x3a   :  { %441 = vperm.xlu0 %995, %v415_v47  }
  0x3b   :  { %526 = vperm.xlu1 %996, %v432_v48  }
  0x3c   :  { %935 = vmatmul.msk.f32.gmra.mxu0 %vm83_vm2, %v65_v49 }
  0x3d   :  { %960 = vmatmul.msk.f32.gmra.mxu1 %vm249_vm3, %v40_v50 }
  0x3e   :  { %521 = vperm.xlu2 %997, %v431_v56  }
  0x42   :  { %700 = vperm.xlu0 %995, %v642_v52  }
  0x43   :  { %695 = vperm.xlu1 %996, %v641_v53  }
  0x44   :  { %936 = vmatmul.msk.f32.gmra.mxu0 %vm83_vm2, %v66_v54 }
  0x45   :  { %961 = vmatmul.msk.f32.gmra.mxu1 %vm249_vm3, %v41_v55 }
  0x46   :  { %690 = vperm.xlu2 %997, %v640_v61  }
  0x4a   :  { %685 = vperm.xlu0 %995, %v639_v57  }
  0x4b   :  { %680 = vperm.xlu1 %996, %v638_v58  }
  0x4c   :  { %937 = vmatmul.msk.f32.gmra.mxu0 %vm83_vm2, %v67_v59 }
  0x4d   :  { %962 = vmatmul.msk.f32.gmra.mxu1 %vm249_vm3, %v42_v60 }
  0x4e   :  { %675 = vperm.xlu2 %997, %v637_v2  }
  0x52   :  { %670 = vperm.xlu0 %995, %v636_v62  }
  0x53   :  { %665 = vperm.xlu1 %996, %v635_v63  }
  0x54   :  { %938 = vmatmul.msk.f32.gmra.mxu0 %vm83_vm2, %v68_v0 }
  0x55   :  { %963 = vmatmul.msk.f32.gmra.mxu1 %vm249_vm3, %v43_v1 }
  0x56   :  { %660 = vperm.xlu2 %997, %v634_v7  }
  0x5a   :  { %655 = vperm.xlu0 %995, %v633_v3  }
  0x5b   :  { %650 = vperm.xlu1 %996, %v632_v4  }
  0x5c   :  { %939 = vmatmul.msk.f32.gmra.mxu0 %vm83_vm2, %v69_v5 }
  0x5d   :  { %964 = vmatmul.msk.f32.gmra.mxu1 %vm249_vm3, %v44_v6 }
  0x5e   :  { %645 = vperm.xlu2 %997, %v631_v11  }
  0x60   :  { %v1398_v33 = vpop.permute.xlu2 %496 }
  0x62   :  { %862 = vperm.xlu0 %995, %v859_v8  }
  0x64   :  { %940 = vmatmul.msk.f32.gmra.mxu0 %vm83_vm2, %v70_v9 }
  0x65   :  { %965 = vmatmul.msk.f32.gmra.mxu1 %vm249_vm3, %v45_v10 }
  0x68   :  { %v1414_v42 = vpop.permute.xlu2 %491 }
  0x6c   :  { %941 = vmatmul.msk.f32.gmra.mxu0 %vm83_vm2, %v71_v12 }
  0x6d   :  { %966 = vmatmul.msk.f32.gmra.mxu1 %vm249_vm3, %v46_v13 }
  0x70   :  { %v1418_v51 = vpop.permute.xlu2 %476 }
  0x74   :  { %942 = vmatmul.msk.f32.gmra.mxu0 %vm83_vm2, %v72_v14  ;;  %v1362_v16 = vpop.permute.xlu0 %516 }
  0x75   :  { %967 = vmatmul.msk.f32.gmra.mxu1 %vm249_vm3, %v47_v15  ;;  %v1370_v19 = vpop.permute.xlu1 %506 }
  0x78   :  { %v467_v0 = vpop.permute.xlu2 %466 }
  0x7c   :  { %943 = vmatmul.msk.f32.gmra.mxu0 %vm83_vm2, %v73_v17  ;;  %v1374_v20 = vpop.permute.xlu0 %511 }
  0x7d   :  { %968 = vmatmul.msk.f32.gmra.mxu1 %vm249_vm3, %v48_v18  ;;  %v1384_v26 = vpop.permute.xlu1 %501 }
  0x81   :  { %v177_v21 = vpop.f32.mrf.mxu0 }
  0x82   :  { %v343_v22 = vpop.f32.mrf.mxu1 }
  0x83   :  { %v1382_v25 = vadd.f32 %v343_v22, %v177_v21  ;;  %v547_v22 = vpop.permute.xlu2 %546 }
  0x84   :  { %944 = vmatmul.msk.f32.gmra.mxu0 %vm83_vm2, %v74_v23  ;;  %v1388_v27 = vpop.permute.xlu0 %486 }
  0x85   :  { %969 = vmatmul.msk.f32.gmra.mxu1 %vm249_vm3, %v49_v24  ;;  %v1402_v35 = vpop.permute.xlu1 %481 }
  0x89   :  { %v180_v28 = vpop.f32.mrf.mxu0 }
  0x8a   :  { %v346_v29 = vpop.f32.mrf.mxu1 }
  0x8b   :  { %v1396_v32 = vadd.f32 %v346_v29, %v180_v28 }
  0x8c   :  { %945 = vmatmul.msk.f32.gmra.mxu0 %vm83_vm2, %v75_v30  ;;  %v472_v34 = vpop.permute.xlu0 %471  ;;  %v234_v36 = vpop.f32.mrf.mxu2 }
  0x8d   :  { %970 = vmatmul.msk.f32.gmra.mxu1 %vm249_vm3, %v50_v31  ;;  %v557_v44 = vpop.permute.xlu1 %556 }
  0x8f   :  { %v237_v52 = vpop.f32.mrf.mxu3 }
  0x91   :  { %v183_v37 = vpop.f32.mrf.mxu0 }
  0x92   :  { %v349_v38 = vpop.f32.mrf.mxu1 }
  0x93   :  { %v1410_v41 = vadd.f32 %v349_v38, %v183_v37 }
  0x94   :  { %946 = vmatmul.msk.f32.gmra.mxu0 %vm83_vm2, %v76_v39  ;;  %v552_v43 = vpop.permute.xlu0 %551  ;;  %v400_v45 = vpop.f32.mrf.mxu2 }
  0x95   :  { %971 = vmatmul.msk.f32.gmra.mxu1 %vm249_vm3, %v51_v40  ;;  %v462_v57 = vpop.permute.xlu1 %461  ;;  %v401_v24 = vadd.f32 %v400_v45, %v234_v36 }
  0x97   :  { %v240_v59 = vpop.f32.mrf.mxu3 }
  0x99   :  { %v186_v46 = vpop.f32.mrf.mxu0 }
  0x9a   :  { %v352_v47 = vpop.f32.mrf.mxu1 }
  0x9b   :  { %v353_v48 = vadd.f32 %v352_v47, %v186_v46 }
  0x9c   :  { %v457_v49 = vpop.permute.xlu0 %456  ;;  %v403_v53 = vpop.f32.mrf.mxu2 }
  0x9d   :  { %v1416_v50 = vadd.f32 %v457_v49, %v353_v48  ;;  %v404_v18 = vadd.f32 %v403_v53, %v237_v52  ;;  %v542_v30 = vpop.permute.xlu1 %541 }
  0x9f   :  { %v243_v2 = vpop.f32.mrf.mxu3  ;;  %v579_v37 = vadd.f32 %v542_v30, %v404_v18 }
  0xa1   :  { %v189_v54 = vpop.f32.mrf.mxu0  ;;  %v603_v46 = vmax.f32 %v579_v37, 0.0 }
  0xa2   :  { %v355_v55 = vpop.f32.mrf.mxu1 }
  0xa3   :  { %v356_v56 = vadd.f32 %v355_v55, %v189_v54 }
  0xa4   :  { %v406_v60 = vpop.f32.mrf.mxu2  ;;  %v537_v31 = vpop.permute.xlu0 %536 }
  0xa5   :  { %v1420_v58 = vadd.f32 %v462_v57, %v356_v56  ;;  %v407_v15 = vadd.f32 %v406_v60, %v240_v59  ;;  %v578_v47 = vadd.f32 %v537_v31, %v401_v24 }
  0xa7   :  { %v246_v9 = vpop.f32.mrf.mxu3  ;;  %v580_v29 = vadd.f32 %v547_v22, %v407_v15 }
  0xa9   :  { %v192_v61 = vpop.f32.mrf.mxu0 }
  0xaa   :  { %v358_v62 = vpop.f32.mrf.mxu1 }
  0xab   :  { %v359_v63 = vadd.f32 %v358_v62, %v192_v61 }
  0xac   :  { %v409_v3 = vpop.f32.mrf.mxu2 }
  0xad   :  { %v1422_v1 = vadd.f32 %v467_v0, %v359_v63  ;;  %v410_v8 = vadd.f32 %v409_v3, %v243_v2 }
  0xaf   :  { %v581_v21 = vadd.f32 %v552_v43, %v410_v8  ;;  %v602_v43 = vmax.f32 %v578_v47, 0.0  ;;  %v587_v47 = vmax.f32 %v1420_v58, 0.0 }
  0xb1   :  { %v195_v4 = vpop.f32.mrf.mxu0  ;;  %v605_v28 = vmax.f32 %v581_v21, 0.0  ;;  %v452_v21 = vpop.permute.xlu2 %451 }
  0xb2   :  { %v361_v5 = vpop.f32.mrf.mxu1 }
  0xb3   :  { %v362_v6 = vadd.f32 %v361_v5, %v195_v4 }
  0xb4   :  { %v412_v10 = vpop.f32.mrf.mxu2 }
  0xb5   :  { %v1424_v7 = vadd.f32 %v472_v34, %v362_v6  ;;  %v413_v13 = vadd.f32 %v412_v10, %v246_v9  ;;  %v604_v34 = vmax.f32 %v580_v29, 0.0 }
  0xb7   :  { %v582_v17 = vadd.f32 %v557_v44, %v413_v13 }
  0xb9   :  { %v198_v11 = vpop.f32.mrf.mxu0  ;;  %v606_v23 = vmax.f32 %v582_v17, 0.0  ;;  %v532_v30 = vpop.permute.xlu2 %531 }
  0xba   :  { %v364_v12 = vpop.f32.mrf.mxu1 }
  0xbb   :  { %v1426_v14 = vadd.f32 %v364_v12, %v198_v11  ;;  %801 = vmatpush.msrb.mxu3 %v606_v23 }
  0xbd   :  { %802 = vmatpush.msrb.mxu3 %v605_v28  ;;  %v566_v28 = vadd.f32 %v1418_v51, %v1426_v14  ;;  %v561_v14 = vadd.f32 %v452_v21, %v1410_v41 }
  0xbf   :  { %803 = vmatpush.msrb.mxu3 %v604_v34  ;;  %v589_v34 = vmax.f32 %v1424_v7, 0.0  ;;  %v586_v7 = vmax.f32 %v1416_v50, 0.0 }
  0xc1   :  { %v201_v38 = vpop.f32.mrf.mxu0  ;;  %804 = vmatpush.msrb.mxu3 %v603_v46 }
  0xc2   :  { %v367_v39 = vpop.f32.mrf.mxu1 }
  0xc3   :  { %v368_v40 = vadd.f32 %v367_v39, %v201_v38  ;;  %805 = vmatpush.msrb.mxu3 %v602_v43  ;;  %v588_v39 = vmax.f32 %v1422_v1, 0.0 }
  0xc5   :  { %v567_v44 = vadd.f32 %v1402_v35, %v368_v40 }
  0xc7   :  { %v591_v31 = vmax.f32 %v567_v44, 0.0 }
  0xc9   :  { %v204_v36 = vpop.f32.mrf.mxu0 }
  0xca   :  { %v370_v45 = vpop.f32.mrf.mxu1 }
  0xcb   :  { %v371_v15 = vadd.f32 %v370_v45, %v204_v36  ;;  %v442_v36 = vpop.permute.xlu0 %441  ;;  %v522_v45 = vpop.permute.xlu2 %521 }
  0xd1   :  { %v207_v48 = vpop.f32.mrf.mxu0 }
  0xd2   :  { %v373_v49 = vpop.f32.mrf.mxu1 }
  0xd3   :  { %v374_v9 = vadd.f32 %v373_v49, %v207_v48 }
  0xd9   :  { %v210_v52 = vpop.f32.mrf.mxu0 }
  0xda   :  { %v376_v53 = vpop.f32.mrf.mxu1 }
  0xdb   :  { %v377_v5 = vadd.f32 %v376_v53, %v210_v52  ;;  %v585_v52 = vmax.f32 %v561_v14, 0.0  ;;  %v559_v53 = vadd.f32 %v442_v36, %v1382_v25  ;;  %v610_v25 = vld [vmem:[%s1546_s5 + $0x18] sm:$0xff] }
  0xdd   :  { %v570_v17 = vadd.f32 %v1398_v33, %v377_v5  ;;  %v447_v33 = vpop.permute.xlu1 %446  ;;  %v583_v50 = vmax.f32 %v559_v53, 0.0  ;;  %v621_v5 = vld [vmem:[%s1546_s5 + $0x70] sm:$0xff] }
  0xde   :  { %v560_v48 = vadd.f32 %v447_v33, %v1396_v32  ;;  %v607_v32 = vld [vmem:[%s1546_s5] sm:$0xff] }
  0xdf   :  { %v594_v22 = vmax.f32 %v570_v17, 0.0  ;;  %v691_v17 = vpop.permute.xlu2 %690 }
  0xe1   :  { %v213_v54 = vpop.f32.mrf.mxu0 }
  0xe2   :  { %v379_v55 = vpop.f32.mrf.mxu1 }
  0xe3   :  { %v380_v2 = vadd.f32 %v379_v55, %v213_v54  ;;  %v584_v54 = vmax.f32 %v560_v48, 0.0  ;;  %v608_v55 = vld [vmem:[%s1546_s5 + $0x8] sm:$0xff] }
  0xe5   :  { %v571_v10 = vadd.f32 %v1384_v26, %v380_v2  ;;  %v527_v51 = vpop.permute.xlu1 %526  ;;  %v620_v2 = vld [vmem:[%s1546_s5 + $0x68] sm:$0xff] }
  0xe7   :  { %v676_v21 = vpop.permute.xlu2 %675 }
  0xe9   :  { %v216_v56 = vpop.f32.mrf.mxu0 }
  0xea   :  { %v382_v57 = vpop.f32.mrf.mxu1 }
  0xeb   :  { %v383_v0 = vadd.f32 %v382_v57, %v216_v56  ;;  %v609_v56 = vld [vmem:[%s1546_s5 + $0x10] sm:$0xff]  ;;  %v612_v57 = vld [vmem:[%s1546_s5 + $0x28] sm:$0xff] }
  0xed   :  { %v572_v6 = vadd.f32 %v1370_v19, %v383_v0  ;;  %v568_v19 = vadd.f32 %v1388_v27, %v371_v15  ;;  %v618_v0 = vld [vmem:[%s1546_s5 + $0x58] sm:$0xff]  ;;  %v629_v15 = vld [vmem:[%s1546_s5 + $0xb0] sm:$0xff] }
  0xef   :  { %v596_v18 = vmax.f32 %v572_v6, 0.0  ;;  %v592_v29 = vmax.f32 %v568_v19, 0.0  ;;  %v624_v6 = vld [vmem:[%s1546_s5 + $0x88] sm:$0xff]  ;;  %v661_v19 = vpop.permute.xlu2 %660 }
  0xf1   :  { %v219_v59 = vpop.f32.mrf.mxu0 }
  0xf2   :  { %v385_v60 = vpop.f32.mrf.mxu1 }
  0xf3   :  { %v386_v61 = vadd.f32 %v385_v60, %v219_v59  ;;  %v611_v59 = vld [vmem:[%s1546_s5 + $0x20] sm:$0xff]  ;;  %v614_v60 = vld [vmem:[%s1546_s5 + $0x38] sm:$0xff] }
  0xf5   :  { %v573_v3 = vadd.f32 %v1374_v20, %v386_v61  ;;  %v569_v20 = vadd.f32 %v1414_v42, %v374_v9  ;;  %v590_v42 = vmax.f32 %v566_v28, 0.0  ;;  %v613_v61 = vld [vmem:[%s1546_s5 + $0x30] sm:$0xff]  ;;  %v626_v9 = vld [vmem:[%s1546_s5 + $0x98] sm:$0xff] }
  0xf7   :  { %v597_v11 = vmax.f32 %v573_v3, 0.0  ;;  %v593_v23 = vmax.f32 %v569_v20, 0.0  ;;  %v619_v3 = vld [vmem:[%s1546_s5 + $0x60] sm:$0xff]  ;;  %v701_v20 = vpop.permute.xlu0 %700 }
  0xf9   :  { %v222_v62 = vpop.f32.mrf.mxu0 }
  0xfa   :  { %v388_v63 = vpop.f32.mrf.mxu1 }
  0xfb   :  { %v389_v35 = vadd.f32 %v388_v63, %v222_v62  ;;  %v616_v62 = vld [vmem:[%s1546_s5 + $0x48] sm:$0xff]  ;;  %v615_v63 = vld [vmem:[%s1546_s5 + $0x40] sm:$0xff] }
  0xfd   :  { %v574_v4 = vadd.f32 %v1362_v16, %v389_v35  ;;  %v595_v16 = vmax.f32 %v571_v10, 0.0  ;;  %v617_v35 = vld [vmem:[%s1546_s5 + $0x50] sm:$0xff] }
  0xfe   :  { %v625_v10 = vld [vmem:[%s1546_s5 + $0x90] sm:$0xff] }
  0xff   :  { %v598_v8 = vmax.f32 %v574_v4, 0.0  ;;  %v622_v4 = vld [vmem:[%s1546_s5 + $0x78] sm:$0xff] }
 0x101   :  { %740 = vmatpush.msra.mxu2 %v598_v8  ;;  %v225_v12 = vpop.f32.mrf.mxu0  ;;  %v623_v8 = vld [vmem:[%s1546_s5 + $0x80] sm:$0xff] }
 0x102   :  { %v391_v13 = vpop.f32.mrf.mxu1 }
 0x103   :  { %741 = vmatpush.msra.mxu2 %v597_v11  ;;  %v392_v40 = vadd.f32 %v391_v13, %v225_v12  ;;  %v628_v11 = vld [vmem:[%s1546_s5 + $0xa8] sm:$0xff]  ;;  %v627_v12 = vld [vmem:[%s1546_s5 + $0xa0] sm:$0xff]  ;;  %v630_v13 = vld [vmem:[%s1546_s5 + $0xb8] sm:$0xff] }
 0x105   :  { %742 = vmatpush.msra.mxu2 %v596_v18  ;;  %v575_v1 = vadd.f32 %v522_v45, %v392_v40  ;;  %v696_v18 = vpop.permute.xlu1 %695 }
 0x107   :  { %743 = vmatpush.msra.mxu2 %v595_v16  ;;  %v599_v58 = vmax.f32 %v575_v1, 0.0 }
 0x109   :  { %744 = vmatpush.msra.mxu2 %v594_v22  ;;  %v228_v26 = vpop.f32.mrf.mxu0  ;;  %v686_v22 = vpop.permute.xlu0 %685 }
 0x10a   :  { %v394_v24 = vpop.f32.mrf.mxu1 }
 0x10b   :  { %745 = vmatpush.msra.mxu2 %v593_v23  ;;  %v395_v27 = vadd.f32 %v394_v24, %v228_v26  ;;  %v646_v24 = vpop.permute.xlu2 %645 }
 0x10d   :  { %746 = vmatpush.msra.mxu2 %v592_v29  ;;  %v576_v43 = vadd.f32 %v527_v51, %v395_v27  ;;  %v681_v16 = vpop.permute.xlu1 %680 }
 0x10f   :  { %747 = vmatpush.msra.mxu2 %v591_v31  ;;  %v600_v41 = vmax.f32 %v576_v43, 0.0 }
 0x111   :  { %748 = vmatpush.msra.mxu2 %v590_v42  ;;  %v231_v37 = vpop.f32.mrf.mxu0 }
 0x112   :  { %v397_v38 = vpop.f32.mrf.mxu1 }
 0x113   :  { %v398_v46 = vadd.f32 %v397_v38, %v231_v37  ;;  %749 = vmatpush.msra.mxu2 %v589_v34 }
 0x115   :  { %750 = vmatpush.msra.mxu2 %v588_v39  ;;  %v577_v44 = vadd.f32 %v532_v30, %v398_v46  ;;  %v666_v23 = vpop.permute.xlu1 %665  ;;  %v671_v30 = vpop.permute.xlu0 %670 }
 0x117   :  { %751 = vmatpush.msra.mxu2 %v587_v47  ;;  %v601_v49 = vmax.f32 %v577_v44, 0.0 }
 0x119   :  { %752 = vmatpush.msra.mxu2 %v586_v7  ;;  %806 = vmatpush.msrb.mxu3 %v601_v49 }
 0x11b   :  { %753 = vmatpush.msra.mxu2 %v585_v52  ;;  %807 = vmatpush.msrb.mxu3 %v600_v41 }
 0x11d   :  { %754 = vmatpush.msra.mxu2 %v584_v54  ;;  %808 = vmatpush.msrb.mxu3 %v599_v58  ;;  %v651_v42 = vpop.permute.xlu1 %650  ;;  %v656_v39 = vpop.permute.xlu0 %655 }
 0x11e   :  { %977 = vmatmul.msk.f32.vlgmr.msrb.gmra.mxu3 %vm703_vm4, %v608_v55 }
 0x11f   :  { %755 = vmatpush.msra.mxu2 %v583_v50 }
 0x120   :  { %756 = vmatmul.f32.vlgmr.msra.gmra.mxu2 %v607_v32 }
 0x126   :  { %978 = vmatmul.msk.f32.gmra.mxu3 %vm703_vm4, %v610_v25 }
 0x128   :  { %759 = vmatmul.f32.gmra.mxu2 %v609_v56 }
 0x12e   :  { %979 = vmatmul.msk.f32.gmra.mxu3 %vm703_vm4, %v612_v57 }
 0x130   :  { %762 = vmatmul.f32.gmra.mxu2 %v611_v59 }
 0x136   :  { %980 = vmatmul.msk.f32.gmra.mxu3 %vm703_vm4, %v614_v60 }
 0x138   :  { %765 = vmatmul.f32.gmra.mxu2 %v613_v61 }
 0x13e   :  { %981 = vmatmul.msk.f32.gmra.mxu3 %vm703_vm4, %v616_v62 }
 0x140   :  { %768 = vmatmul.f32.gmra.mxu2 %v615_v63 }
 0x146   :  { %982 = vmatmul.msk.f32.gmra.mxu3 %vm703_vm4, %v618_v0 }
 0x148   :  { %771 = vmatmul.f32.gmra.mxu2 %v617_v35 }
 0x14e   :  { %983 = vmatmul.msk.f32.gmra.mxu3 %vm703_vm4, %v620_v2 }
 0x150   :  { %774 = vmatmul.f32.gmra.mxu2 %v619_v3 }
 0x156   :  { %984 = vmatmul.msk.f32.gmra.mxu3 %vm703_vm4, %v622_v4 }
 0x158   :  { %777 = vmatmul.f32.gmra.mxu2 %v621_v5 }
 0x15e   :  { %985 = vmatmul.msk.f32.gmra.mxu3 %vm703_vm4, %v624_v6 }
 0x160   :  { %780 = vmatmul.f32.gmra.mxu2 %v623_v8 }
 0x166   :  { %986 = vmatmul.msk.f32.gmra.mxu3 %vm703_vm4, %v626_v9 }
 0x168   :  { %783 = vmatmul.f32.gmra.mxu2 %v625_v10 }
 0x16e   :  { %987 = vmatmul.msk.f32.gmra.mxu3 %vm703_vm4, %v628_v11 }
 0x170   :  { %786 = vmatmul.f32.gmra.mxu2 %v627_v12 }
 0x176   :  { %988 = vmatmul.msk.f32.gmra.mxu3 %vm703_vm4, %v630_v13 }
 0x178   :  { %789 = vmatmul.f32.gmra.mxu2 %v629_v15 }
 0x1a1   :  { %v810_v26 = vpop.f32.mrf.mxu3 }
 0x1a3   :  { %v757_v28 = vpop.f32.mrf.mxu2 }
 0x1a4   :  { %v758_v29 = vadd.f32 %v757_v28, %v646_v24  ;;  %v863_v24 = vpop.permute.xlu0 %862 }
 0x1a6   :  { %v1529_v33 = vadd.f32 %v810_v26, %v758_v29  ;;  %v858_v26 = vld [vmem:[%s1548_s7] sm:$0x3]  ;;  %s1029_s7 = smov [#allocation2]  }
 0x1a7   :  { %s916_s11 = sshll.u32 %s1029_s7, 4  ;;  %s917_s11 = int_to_ptr.vmem [resolvable:$true] %s916_s11 }
 0x1a9   :  { %v813_v31 = vpop.f32.mrf.mxu3 }
 0x1ab   :  { %v760_v34 = vpop.f32.mrf.mxu2 }
 0x1ac   :  { %v761_v27 = vadd.f32 %v760_v34, %v651_v42 }
 0x1ae   :  { %v1531_v37 = vadd.f32 %v813_v31, %v761_v27 }
 0x1b1   :  { %v816_v38 = vpop.f32.mrf.mxu3 }
 0x1b3   :  { %v763_v40 = vpop.f32.mrf.mxu2 }
 0x1b4   :  { %v764_v46 = vadd.f32 %v763_v40, %v656_v39 }
 0x1b6   :  { %v817_v51 = vadd.f32 %v816_v38, %v764_v46 }
 0x1b9   :  { %v819_v14 = vpop.f32.mrf.mxu3 }
 0x1bb   :  { %v766_v47 = vpop.f32.mrf.mxu2 }
 0x1bc   :  { %v767_v44 = vadd.f32 %v766_v47, %v661_v19  ;;  %v848_v19 = vmax.f32 %v817_v51, 0.0 }
 0x1be   :  { %v820_v43 = vadd.f32 %v819_v14, %v767_v44 }
 0x1c1   :  { %v822_v36 = vpop.f32.mrf.mxu3 }
 0x1c3   :  { %v769_v45 = vpop.f32.mrf.mxu2 }
 0x1c4   :  { %v770_v7 = vadd.f32 %v769_v45, %v666_v23  ;;  %v846_v23 = vmax.f32 %v1529_v33, 0.0 }
 0x1c6   :  { %v823_v48 = vadd.f32 %v822_v36, %v770_v7 }
 0x1c9   :  { %v825_v49 = vpop.f32.mrf.mxu3 }
 0x1cb   :  { %v772_v1 = vpop.f32.mrf.mxu2 }
 0x1cc   :  { %v773_v9 = vadd.f32 %v772_v1, %v671_v30 }
 0x1ce   :  { %v826_v15 = vadd.f32 %v825_v49, %v773_v9 }
 0x1d1   :  { %v828_v52 = vpop.f32.mrf.mxu3 }
 0x1d3   :  { %v775_v53 = vpop.f32.mrf.mxu2 }
 0x1d4   :  { %v776_v5 = vadd.f32 %v775_v53, %v676_v21  ;;  %v849_v21 = vmax.f32 %v820_v43, 0.0 }
 0x1d6   :  { %v829_v12 = vadd.f32 %v828_v52, %v776_v5 }
 0x1d9   :  { %v831_v41 = vpop.f32.mrf.mxu3 }
 0x1db   :  { %v778_v54 = vpop.f32.mrf.mxu2 }
 0x1dc   :  { %v779_v2 = vadd.f32 %v778_v54, %v681_v16  ;;  %v850_v16 = vmax.f32 %v823_v48, 0.0 }
 0x1de   :  { %v832_v10 = vadd.f32 %v831_v41, %v779_v2 }
 0x1e1   :  { %v834_v58 = vpop.f32.mrf.mxu3 }
 0x1e3   :  { %v781_v55 = vpop.f32.mrf.mxu2 }
 0x1e4   :  { %v782_v63 = vadd.f32 %v781_v55, %v686_v22  ;;  %v847_v22 = vmax.f32 %v1531_v37, 0.0 }
 0x1e6   :  { %v835_v6 = vadd.f32 %v834_v58, %v782_v63 }
 0x1e8   :  { %v854_v13 = vmax.f32 %v835_v6, 0.0 }
 0x1e9   :  { %v837_v50 = vpop.f32.mrf.mxu3 }
 0x1eb   :  { %v784_v32 = vpop.f32.mrf.mxu2 }
 0x1ec   :  { %v785_v61 = vadd.f32 %v784_v32, %v691_v17  ;;  %v853_v17 = vmax.f32 %v832_v10, 0.0 }
 0x1ee   :  { %v838_v3 = vadd.f32 %v837_v50, %v785_v61 }
 0x1f0   :  { %v855_v11 = vmax.f32 %v838_v3, 0.0 }
 0x1f1   :  { %v840_v25 = vpop.f32.mrf.mxu3 }
 0x1f3   :  { %v787_v56 = vpop.f32.mrf.mxu2 }
 0x1f4   :  { %v788_v57 = vadd.f32 %v787_v56, %v696_v18  ;;  %v852_v18 = vmax.f32 %v829_v12, 0.0 }
 0x1f6   :  { %v841_v0 = vadd.f32 %v840_v25, %v788_v57 }
 0x1f8   :  { %v856_v8 = vmax.f32 %v841_v0, 0.0 }
 0x1f9   :  { %v843_v60 = vpop.f32.mrf.mxu3 }
 0x1fb   :  { %v790_v59 = vpop.f32.mrf.mxu2 }
 0x1fc   :  { %v791_v62 = vadd.f32 %v790_v59, %v701_v20  ;;  %v851_v20 = vmax.f32 %v826_v15, 0.0 }
 0x1fe   :  { %v844_v35 = vadd.f32 %v843_v60, %v791_v62 }
 0x200   :  { %v857_v4 = vmax.f32 %v844_v35, 0.0 }
 0x202   :  { %873 = vmatpush.msra.mxu3 %v857_v4 }
 0x204   :  { %874 = vmatpush.msra.mxu3 %v856_v8 }
 0x206   :  { %875 = vmatpush.msra.mxu3 %v855_v11 }
 0x208   :  { %876 = vmatpush.msra.mxu3 %v854_v13 }
 0x20a   :  { %877 = vmatpush.msra.mxu3 %v853_v17 }
 0x20c   :  { %878 = vmatpush.msra.mxu3 %v852_v18 }
 0x20e   :  { %879 = vmatpush.msra.mxu3 %v851_v20 }
 0x210   :  { %880 = vmatpush.msra.mxu3 %v850_v16 }
 0x212   :  { %881 = vmatpush.msra.mxu3 %v849_v21 }
 0x214   :  { %882 = vmatpush.msra.mxu3 %v848_v19 }
 0x216   :  { %883 = vmatpush.msra.mxu3 %v847_v22 }
 0x218   :  { %884 = vmatpush.msra.mxu3 %v846_v23 }
 0x219   :  { %989 = vmatmul.msk.f32.vlgmr.msra.gmra.mxu3 %vm865_vm5, %v858_v26 }
 0x29c   :  { %v886_v28 = vpop.f32.mrf.mxu3 }
 0x29d   :  { %v887_v29 = vadd.f32 %v886_v28, %v863_v24 }
 0x29f   :  { %v890_v30 = vmin.f32 %v887_v29, 20.0  ;;  %vm889_vm8 = vcmp.gt.f32.partialorder %v887_v29, 20.0 }
 0x2a1   :  { %v891_v31 = vmul.f32 1.442695, %v890_v30 }
 0x2a3   :  { %998 = vpow2.f32 %v891_v31 }
 0x2a9   :  { %v999_v42 = vpop.eup %998 }
 0x2aa   :  { %v893_v34 = vadd.f32 1.0, %v999_v42  ;;  %v896_v27 = vmul.f32 -0.5, %v999_v42  ;;  %v899_v33 = vand.u32 2147483647, %v999_v42 }
 0x2ac   :  { %1000 = vlog2.f32 %v893_v34  ;;  %v897_v37 = vadd.f32 1.0, %v896_v27  ;;  %vm900_vm6 = vcmp.lt.f32.partialorder %v899_v33, 0.0004427343 }
 0x2ae   :  { %v898_v40 = vmul.f32 %v999_v42, %v897_v37 }
 0x2b2   :  { %v1001_v38 = vpop.eup %1000 }
 0x2b3   :  { %v895_v39 = vmul.f32 0.6931472, %v1001_v38 }
 0x2b5   :  { %v901_v46 = vsel %vm900_vm6, %v898_v40, %v895_v39 }
 0x2b6   :  { %v902_v51 = vsel %vm889_vm8, %v887_v29, %v901_v46 }
 0x2b7   :  { %v906_v14 = vrot.slane %v902_v51, 1  ;;  %904 = vst.msk [vmem:[#allocation2] sm:$0x3] %vm903_vm7, %v902_v51 }
 0x2b9   :  { %v908_v47 = vadd.f32 %v906_v14, %v902_v51 }
 0x2bb   :  { %910 = vst.msk [vmem:[#allocation2 + $0x2] sm:$0x1] %vm909_vm9, %v908_v47 }
 0x2bc   :  { %921 = dma.vmem_to_hbm [thread:$0]  %s917_s11, 64, %s919_s4, [#allocation3]  }
 0x2bd   :  { %1026 = dma.done.wait [#allocation3], 64  }
 0x2be   :  { %1027 = vsyncadd [#allocation3], 4294967232 }
 0x2bf   :  { %926 = vsyncpa [#allocation3], 1 }

</bundles_post_ra>
